<compile_context>
chip_gen: v6e
topology: v6e:2x2x1
jax: 0.10.0
libtpu: 0.0.40
codegen_flags: <defaults>
</compile_context>

<pallas_src>
import functools

import jax
import jax.numpy as jnp
import numpy as np
from jax.experimental import pallas as pl
from jax.experimental.pallas import tpu as pltpu


def force_1d(x):
    # NCHW (B, C, H, W) -> (B, H, C, W) -> (B, H, C*W), matching the torch code.
    if x.ndim == 4:
        x = jnp.swapaxes(x, -2, -3)
        x = x.reshape(x.shape[0], x.shape[1], -1)
    return x


def _lstm_kernel(x_ref, wih_ref, whh_ref, b_ref, o_ref, *, S, B, E, H):
    """Whole-batch LSTM in a single kernel invocation.

    x_ref  : (S*B, E)   time-major inputs, row (t*B + b) = x[b, t]
    wih_ref: (E, 4H)    transposed input-projection weight, gate order (i,f,o,g)
    whh_ref: (H, 4H)    transposed hidden-projection weight, gate order (i,f,o,g)
    b_ref  : (1, 4H)    combined bias b_ih + b_hh, gate order (i,f,o,g)
    o_ref  : (B, S*H)   lane-dense output, o_ref[b, t*H:(t+1)*H] = h_t[b]
    """
    # Fused input projection for every (t, b): one lane-dense MXU pass.
    xg = jnp.dot(x_ref[...], wih_ref[...],
                 preferred_element_type=jnp.float32) + b_ref[...]      # (S*B, 4H)

    w_hh = whh_ref[...]                                                # hoisted once
    h = jnp.zeros((B, H), jnp.float32)
    c = jnp.zeros((B, H), jnp.float32)

    # S is small & static: fully unroll; only the tiny hidden matmul is serial.
    for t in range(S):
        gates = xg[t * B:(t + 1) * B, :] + jnp.dot(
            h, w_hh, preferred_element_type=jnp.float32)               # (B, 4H)
        # Gate order is (i, f, o, g): one sigmoid slab + one tanh slab.
        sig = 0.5 * (jnp.tanh(0.5 * gates[:, :3 * H]) + 1.0)           # i, f, o
        g_g = jnp.tanh(gates[:, 3 * H:])                               # g
        i_g = sig[:, 0 * H:1 * H]
        f_g = sig[:, 1 * H:2 * H]
        o_g = sig[:, 2 * H:3 * H]
        c = f_g * c + i_g * g_g
        h = o_g * jnp.tanh(c)
        o_ref[:, t * H:(t + 1) * H] = h


def rnn_pallas(x_bse, params):
    """LSTM forward (batch_first). x_bse: (B, S, E) float32 -> (B, S, H).

    `params` are in torch layout: pre-transposed weights with gate order
    (i, f, g, o); the wrapper permutes gate columns to (i, f, o, g) for the
    kernel's fused activation slabs.
    """
    B, S, E = x_bse.shape
    w_ih_t, w_hh_t, b = params
    H = w_hh_t.shape[0]

    # Gate-column permutation (i, f, g, o) -> (i, f, o, g).
    perm = jnp.concatenate([
        jnp.arange(0, 2 * H),            # i, f
        jnp.arange(3 * H, 4 * H),        # o
        jnp.arange(2 * H, 3 * H),        # g
    ])
    w_ih_p = w_ih_t[:, perm]
    w_hh_p = w_hh_t[:, perm]
    b_p = b[:, perm]

    # Time-major flat layout: each timestep is a contiguous 2-sublane row
    # block, so the per-step gate slice inside the kernel is a cheap
    # contiguous sublane slice of the precomputed projection.
    x_flat = jnp.transpose(x_bse, (1, 0, 2)).reshape(S * B, E)

    kernel = functools.partial(_lstm_kernel, S=S, B=B, E=E, H=H)
    out = pl.pallas_call(
        kernel,
        out_shape=jax.ShapeDtypeStruct((B, S * H), jnp.float32),
        grid_spec=pltpu.PrefetchScalarGridSpec(
            num_scalar_prefetch=0,
            grid=(1,),  # whole problem in one grid step -> no pipeline overhead
            in_specs=[
                pl.BlockSpec((S * B, E), lambda i: (0, 0)),     # x (time-major)
                pl.BlockSpec((E, 4 * H), lambda i: (0, 0)),     # W_ih^T (i,f,o,g)
                pl.BlockSpec((H, 4 * H), lambda i: (0, 0)),     # W_hh^T (i,f,o,g)
                pl.BlockSpec((1, 4 * H), lambda i: (0, 0)),     # b_ih + b_hh
            ],
            out_specs=pl.BlockSpec((B, S * H), lambda i: (0, 0)),
        ),
        compiler_params=pltpu.CompilerParams(
            dimension_semantics=("arbitrary",)),
    )(x_flat, w_ih_p, w_hh_p, b_p)

    # Metadata-only reshape: out[b, t*H + j] = h_t[b, j].
    return out.reshape(B, S, H)


def rnn_reference(x_bse, params):
    """Pure-JAX reference mirroring torch.nn.LSTM(batch_first=True), zero init."""
    B, S, E = x_bse.shape
    w_ih_t, w_hh_t, b = params
    H = w_hh_t.shape[0]
    x_sbe = jnp.transpose(x_bse, (1, 0, 2))                             # (S, B, E)

    def step(carry, x_t):
        h, c = carry
        gates = x_t @ w_ih_t + h @ w_hh_t + b[0]
        i_g, f_g, g_g, o_g = jnp.split(gates, 4, axis=-1)
        i_g = jax.nn.sigmoid(i_g)
        f_g = jax.nn.sigmoid(f_g)
        g_g = jnp.tanh(g_g)
        o_g = jax.nn.sigmoid(o_g)
        c = f_g * c + i_g * g_g
        h = o_g * jnp.tanh(c)
        return (h, c), h

    init = (jnp.zeros((B, H), jnp.float32), jnp.zeros((B, H), jnp.float32))
    _, hs = jax.lax.scan(step, init, x_sbe)                             # (S, B, H)
    return jnp.transpose(hs, (1, 0, 2))


if __name__ == "__main__":
    # RNN(d_model=C*W, rnn_type='lstm', bidirectional=False) on an NCHW input.
    B, C, Himg, W = 2, 4, 16, 16
    d_model = C * W            # 64 = embedding dim after force_1d
    hidden = d_model           # d_model // (1 + bidirectional), bidirectional=False

    key = jax.random.PRNGKey(0)
    k_x, k_wih, k_whh, k_bih, k_bhh = jax.random.split(key, 5)

    x_nchw = jax.random.normal(k_x, (B, C, Himg, W), dtype=jnp.float32)
    x_bse = force_1d(x_nchw)                                            # (2, 16, 64)

    # Synthetic LSTM parameters (torch layout, pre-transposed; gate order i,f,g,o).
    w_ih_t = 0.1 * jax.random.normal(k_wih, (d_model, 4 * hidden), jnp.float32)
    w_hh_t = 0.1 * jax.random.normal(k_whh, (hidden, 4 * hidden), jnp.float32)
    b_ih = 0.1 * jax.random.normal(k_bih, (4 * hidden,), jnp.float32)
    b_hh = 0.1 * jax.random.normal(k_bhh, (4 * hidden,), jnp.float32)
    b = (b_ih + b_hh).reshape(1, 4 * hidden)
    params = (w_ih_t, w_hh_t, b)

    out = rnn_pallas(x_bse, params)
    out = jax.block_until_ready(out)

    ref = rnn_reference(x_bse, params)
    np.testing.assert_allclose(np.asarray(out), np.asarray(ref),
                               rtol=1e-4, atol=1e-4)
    print("KERNEL_OK")
</pallas_src>

<mosaic_0001>
module attributes {stable_mosaic.version = 11 : i64} {
  func.func @_lstm_kernel(%arg0: i32, %arg1: memref<32x64xf32, #tpu.memory_space<vmem>>, %arg2: memref<64x256xf32, #tpu.memory_space<vmem>>, %arg3: memref<64x256xf32, #tpu.memory_space<vmem>>, %arg4: memref<1x256xf32, #tpu.memory_space<vmem>>, %arg5: memref<2x1024xf32, #tpu.memory_space<vmem>>) attributes {dimension_semantics = [#tpu.dimension_semantics<arbitrary>], iteration_bounds = array<i64: 1>, scalar_prefetch = 0 : i64, scratch_operands = 0 : i64, tpu.core_type = #tpu.core_type<tc>, window_params = [{pipeline_mode = #tpu.pipeline_mode<synchronous>, transform_indices = @transform_0, window_bounds = array<i64: 32, 64>}, {pipeline_mode = #tpu.pipeline_mode<synchronous>, transform_indices = @transform_1, window_bounds = array<i64: 64, 256>}, {pipeline_mode = #tpu.pipeline_mode<synchronous>, transform_indices = @transform_2, window_bounds = array<i64: 64, 256>}, {pipeline_mode = #tpu.pipeline_mode<synchronous>, transform_indices = @transform_3, window_bounds = array<i64: 1, 256>}, {pipeline_mode = #tpu.pipeline_mode<synchronous>, transform_indices = @transform_4, window_bounds = array<i64: 2, 1024>}]} {
    %c0 = arith.constant 0 : index
    %c0_0 = arith.constant 0 : index
    %0 = vector.load %arg1[%c0, %c0_0] : memref<32x64xf32, #tpu.memory_space<vmem>>, vector<32x64xf32>
    %c0_1 = arith.constant 0 : index
    %c0_2 = arith.constant 0 : index
    %1 = vector.load %arg2[%c0_1, %c0_2] : memref<64x256xf32, #tpu.memory_space<vmem>>, vector<64x256xf32>
    %cst = arith.constant dense<0.000000e+00> : vector<32x256xf32>
    %2 = tpu.matmul %0, %1, %cst {dimension_numbers = #tpu.dot_dimension_numbers<[1], [0], [0], [1], [0, 0, 1, 1], [], []>} : vector<32x64xf32>, vector<64x256xf32>, vector<32x256xf32> -> vector<32x256xf32>
    %c0_3 = arith.constant 0 : index
    %c0_4 = arith.constant 0 : index
    %3 = vector.load %arg4[%c0_3, %c0_4] : memref<1x256xf32, #tpu.memory_space<vmem>>, vector<1x256xf32>
    %4 = vector.broadcast %3 : vector<1x256xf32> to vector<32x256xf32>
    %5 = arith.addf %2, %4 : vector<32x256xf32>
    %c0_5 = arith.constant 0 : index
    %c0_6 = arith.constant 0 : index
    %6 = vector.load %arg3[%c0_5, %c0_6] : memref<64x256xf32, #tpu.memory_space<vmem>>, vector<64x256xf32>
    %cst_7 = arith.constant 0.000000e+00 : f32
    %7 = vector.broadcast %cst_7 : f32 to vector<2x64xf32>
    %cst_8 = arith.constant 0.000000e+00 : f32
    %8 = vector.broadcast %cst_8 : f32 to vector<2x64xf32>
    %9 = vector.extract_strided_slice %5 {offsets = [0, 0], sizes = [2, 256], strides = [1, 1]} : vector<32x256xf32> to vector<2x256xf32>
    %cst_9 = arith.constant dense<0.000000e+00> : vector<2x256xf32>
    %10 = tpu.matmul %7, %6, %cst_9 {dimension_numbers = #tpu.dot_dimension_numbers<[1], [0], [0], [1], [0, 0, 1, 1], [], []>} : vector<2x64xf32>, vector<64x256xf32>, vector<2x256xf32> -> vector<2x256xf32>
    %11 = arith.addf %9, %10 : vector<2x256xf32>
    %12 = vector.extract_strided_slice %11 {offsets = [0, 0], sizes = [2, 192], strides = [1, 1]} : vector<2x256xf32> to vector<2x192xf32>
    %cst_10 = arith.constant 5.000000e-01 : f32
    %13 = vector.broadcast %cst_10 : f32 to vector<2x192xf32>
    %14 = arith.mulf %13, %12 : vector<2x192xf32>
    %15 = math.tanh %14 : vector<2x192xf32>
    %cst_11 = arith.constant 1.000000e+00 : f32
    %16 = vector.broadcast %cst_11 : f32 to vector<2x192xf32>
    %17 = arith.addf %15, %16 : vector<2x192xf32>
    %cst_12 = arith.constant 5.000000e-01 : f32
    %18 = vector.broadcast %cst_12 : f32 to vector<2x192xf32>
    %19 = arith.mulf %18, %17 : vector<2x192xf32>
    %20 = vector.extract_strided_slice %11 {offsets = [0, 192], sizes = [2, 64], strides = [1, 1]} : vector<2x256xf32> to vector<2x64xf32>
    %21 = math.tanh %20 : vector<2x64xf32>
    %22 = vector.extract_strided_slice %19 {offsets = [0, 0], sizes = [2, 64], strides = [1, 1]} : vector<2x192xf32> to vector<2x64xf32>
    %23 = vector.extract_strided_slice %19 {offsets = [0, 64], sizes = [2, 64], strides = [1, 1]} : vector<2x192xf32> to vector<2x64xf32>
    %24 = vector.extract_strided_slice %19 {offsets = [0, 128], sizes = [2, 64], strides = [1, 1]} : vector<2x192xf32> to vector<2x64xf32>
    %25 = arith.mulf %23, %8 : vector<2x64xf32>
    %26 = arith.mulf %22, %21 : vector<2x64xf32>
    %27 = arith.addf %25, %26 : vector<2x64xf32>
    %28 = math.tanh %27 : vector<2x64xf32>
    %29 = arith.mulf %24, %28 : vector<2x64xf32>
    %c0_13 = arith.constant 0 : index
    %c0_14 = arith.constant 0 : index
    %30 = vector.load %arg5[%c0_13, %c0_14] : memref<2x1024xf32, #tpu.memory_space<vmem>>, vector<2x64xf32>
    tpu.vector_store %arg5[%c0_13, %c0_14], %29 {strides = array<i32>} : memref<2x1024xf32, #tpu.memory_space<vmem>>, vector<2x64xf32>,
    %31 = vector.extract_strided_slice %5 {offsets = [2, 0], sizes = [2, 256], strides = [1, 1]} : vector<32x256xf32> to vector<2x256xf32>
    %cst_15 = arith.constant dense<0.000000e+00> : vector<2x256xf32>
    %32 = tpu.matmul %29, %6, %cst_15 {dimension_numbers = #tpu.dot_dimension_numbers<[1], [0], [0], [1], [0, 0, 1, 1], [], []>} : vector<2x64xf32>, vector<64x256xf32>, vector<2x256xf32> -> vector<2x256xf32>
    %33 = arith.addf %31, %32 : vector<2x256xf32>
    %34 = vector.extract_strided_slice %33 {offsets = [0, 0], sizes = [2, 192], strides = [1, 1]} : vector<2x256xf32> to vector<2x192xf32>
    %cst_16 = arith.constant 5.000000e-01 : f32
    %35 = vector.broadcast %cst_16 : f32 to vector<2x192xf32>
    %36 = arith.mulf %35, %34 : vector<2x192xf32>
    %37 = math.tanh %36 : vector<2x192xf32>
    %cst_17 = arith.constant 1.000000e+00 : f32
    %38 = vector.broadcast %cst_17 : f32 to vector<2x192xf32>
    %39 = arith.addf %37, %38 : vector<2x192xf32>
    %cst_18 = arith.constant 5.000000e-01 : f32
    %40 = vector.broadcast %cst_18 : f32 to vector<2x192xf32>
    %41 = arith.mulf %40, %39 : vector<2x192xf32>
    %42 = vector.extract_strided_slice %33 {offsets = [0, 192], sizes = [2, 64], strides = [1, 1]} : vector<2x256xf32> to vector<2x64xf32>
    %43 = math.tanh %42 : vector<2x64xf32>
    %44 = vector.extract_strided_slice %41 {offsets = [0, 0], sizes = [2, 64], strides = [1, 1]} : vector<2x192xf32> to vector<2x64xf32>
    %45 = vector.extract_strided_slice %41 {offsets = [0, 64], sizes = [2, 64], strides = [1, 1]} : vector<2x192xf32> to vector<2x64xf32>
    %46 = vector.extract_strided_slice %41 {offsets = [0, 128], sizes = [2, 64], strides = [1, 1]} : vector<2x192xf32> to vector<2x64xf32>
    %47 = arith.mulf %45, %27 : vector<2x64xf32>
    %48 = arith.mulf %44, %43 : vector<2x64xf32>
    %49 = arith.addf %47, %48 : vector<2x64xf32>
    %50 = math.tanh %49 : vector<2x64xf32>
    %51 = arith.mulf %46, %50 : vector<2x64xf32>
    %c0_19 = arith.constant 0 : index
    %c64 = arith.constant 64 : index
    %52 = vector.load %arg5[%c0_19, %c64] : memref<2x1024xf32, #tpu.memory_space<vmem>>, vector<2x64xf32>
    tpu.vector_store %arg5[%c0_19, %c64], %51 {strides = array<i32>} : memref<2x1024xf32, #tpu.memory_space<vmem>>, vector<2x64xf32>,
    %53 = vector.extract_strided_slice %5 {offsets = [4, 0], sizes = [2, 256], strides = [1, 1]} : vector<32x256xf32> to vector<2x256xf32>
    %cst_20 = arith.constant dense<0.000000e+00> : vector<2x256xf32>
    %54 = tpu.matmul %51, %6, %cst_20 {dimension_numbers = #tpu.dot_dimension_numbers<[1], [0], [0], [1], [0, 0, 1, 1], [], []>} : vector<2x64xf32>, vector<64x256xf32>, vector<2x256xf32> -> vector<2x256xf32>
    %55 = arith.addf %53, %54 : vector<2x256xf32>
    %56 = vector.extract_strided_slice %55 {offsets = [0, 0], sizes = [2, 192], strides = [1, 1]} : vector<2x256xf32> to vector<2x192xf32>
    %cst_21 = arith.constant 5.000000e-01 : f32
    %57 = vector.broadcast %cst_21 : f32 to vector<2x192xf32>
    %58 = arith.mulf %57, %56 : vector<2x192xf32>
    %59 = math.tanh %58 : vector<2x192xf32>
    %cst_22 = arith.constant 1.000000e+00 : f32
    %60 = vector.broadcast %cst_22 : f32 to vector<2x192xf32>
    %61 = arith.addf %59, %60 : vector<2x192xf32>
    %cst_23 = arith.constant 5.000000e-01 : f32
    %62 = vector.broadcast %cst_23 : f32 to vector<2x192xf32>
    %63 = arith.mulf %62, %61 : vector<2x192xf32>
    %64 = vector.extract_strided_slice %55 {offsets = [0, 192], sizes = [2, 64], strides = [1, 1]} : vector<2x256xf32> to vector<2x64xf32>
    %65 = math.tanh %64 : vector<2x64xf32>
    %66 = vector.extract_strided_slice %63 {offsets = [0, 0], sizes = [2, 64], strides = [1, 1]} : vector<2x192xf32> to vector<2x64xf32>
    %67 = vector.extract_strided_slice %63 {offsets = [0, 64], sizes = [2, 64], strides = [1, 1]} : vector<2x192xf32> to vector<2x64xf32>
    %68 = vector.extract_strided_slice %63 {offsets = [0, 128], sizes = [2, 64], strides = [1, 1]} : vector<2x192xf32> to vector<2x64xf32>
    %69 = arith.mulf %67, %49 : vector<2x64xf32>
    %70 = arith.mulf %66, %65 : vector<2x64xf32>
    %71 = arith.addf %69, %70 : vector<2x64xf32>
    %72 = math.tanh %71 : vector<2x64xf32>
    %73 = arith.mulf %68, %72 : vector<2x64xf32>
    %c0_24 = arith.constant 0 : index
    %c128 = arith.constant 128 : index
    %74 = vector.load %arg5[%c0_24, %c128] : memref<2x1024xf32, #tpu.memory_space<vmem>>, vector<2x64xf32>
    tpu.vector_store %arg5[%c0_24, %c128], %73 {strides = array<i32>} : memref<2x1024xf32, #tpu.memory_space<vmem>>, vector<2x64xf32>,
    %75 = vector.extract_strided_slice %5 {offsets = [6, 0], sizes = [2, 256], strides = [1, 1]} : vector<32x256xf32> to vector<2x256xf32>
    %cst_25 = arith.constant dense<0.000000e+00> : vector<2x256xf32>
    %76 = tpu.matmul %73, %6, %cst_25 {dimension_numbers = #tpu.dot_dimension_numbers<[1], [0], [0], [1], [0, 0, 1, 1], [], []>} : vector<2x64xf32>, vector<64x256xf32>, vector<2x256xf32> -> vector<2x256xf32>
    %77 = arith.addf %75, %76 : vector<2x256xf32>
    %78 = vector.extract_strided_slice %77 {offsets = [0, 0], sizes = [2, 192], strides = [1, 1]} : vector<2x256xf32> to vector<2x192xf32>
    %cst_26 = arith.constant 5.000000e-01 : f32
    %79 = vector.broadcast %cst_26 : f32 to vector<2x192xf32>
    %80 = arith.mulf %79, %78 : vector<2x192xf32>
    %81 = math.tanh %80 : vector<2x192xf32>
    %cst_27 = arith.constant 1.000000e+00 : f32
    %82 = vector.broadcast %cst_27 : f32 to vector<2x192xf32>
    %83 = arith.addf %81, %82 : vector<2x192xf32>
    %cst_28 = arith.constant 5.000000e-01 : f32
    %84 = vector.broadcast %cst_28 : f32 to vector<2x192xf32>
    %85 = arith.mulf %84, %83 : vector<2x192xf32>
    %86 = vector.extract_strided_slice %77 {offsets = [0, 192], sizes = [2, 64], strides = [1, 1]} : vector<2x256xf32> to vector<2x64xf32>
    %87 = math.tanh %86 : vector<2x64xf32>
    %88 = vector.extract_strided_slice %85 {offsets = [0, 0], sizes = [2, 64], strides = [1, 1]} : vector<2x192xf32> to vector<2x64xf32>
    %89 = vector.extract_strided_slice %85 {offsets = [0, 64], sizes = [2, 64], strides = [1, 1]} : vector<2x192xf32> to vector<2x64xf32>
    %90 = vector.extract_strided_slice %85 {offsets = [0, 128], sizes = [2, 64], strides = [1, 1]} : vector<2x192xf32> to vector<2x64xf32>
    %91 = arith.mulf %89, %71 : vector<2x64xf32>
    %92 = arith.mulf %88, %87 : vector<2x64xf32>
    %93 = arith.addf %91, %92 : vector<2x64xf32>
    %94 = math.tanh %93 : vector<2x64xf32>
    %95 = arith.mulf %90, %94 : vector<2x64xf32>
    %c0_29 = arith.constant 0 : index
    %c192 = arith.constant 192 : index
    %96 = vector.load %arg5[%c0_29, %c192] : memref<2x1024xf32, #tpu.memory_space<vmem>>, vector<2x64xf32>
    tpu.vector_store %arg5[%c0_29, %c192], %95 {strides = array<i32>} : memref<2x1024xf32, #tpu.memory_space<vmem>>, vector<2x64xf32>,
    %97 = vector.extract_strided_slice %5 {offsets = [8, 0], sizes = [2, 256], strides = [1, 1]} : vector<32x256xf32> to vector<2x256xf32>
    %cst_30 = arith.constant dense<0.000000e+00> : vector<2x256xf32>
    %98 = tpu.matmul %95, %6, %cst_30 {dimension_numbers = #tpu.dot_dimension_numbers<[1], [0], [0], [1], [0, 0, 1, 1], [], []>} : vector<2x64xf32>, vector<64x256xf32>, vector<2x256xf32> -> vector<2x256xf32>
    %99 = arith.addf %97, %98 : vector<2x256xf32>
    %100 = vector.extract_strided_slice %99 {offsets = [0, 0], sizes = [2, 192], strides = [1, 1]} : vector<2x256xf32> to vector<2x192xf32>
    %cst_31 = arith.constant 5.000000e-01 : f32
    %101 = vector.broadcast %cst_31 : f32 to vector<2x192xf32>
    %102 = arith.mulf %101, %100 : vector<2x192xf32>
    %103 = math.tanh %102 : vector<2x192xf32>
    %cst_32 = arith.constant 1.000000e+00 : f32
    %104 = vector.broadcast %cst_32 : f32 to vector<2x192xf32>
    %105 = arith.addf %103, %104 : vector<2x192xf32>
    %cst_33 = arith.constant 5.000000e-01 : f32
    %106 = vector.broadcast %cst_33 : f32 to vector<2x192xf32>
    %107 = arith.mulf %106, %105 : vector<2x192xf32>
    %108 = vector.extract_strided_slice %99 {offsets = [0, 192], sizes = [2, 64], strides = [1, 1]} : vector<2x256xf32> to vector<2x64xf32>
    %109 = math.tanh %108 : vector<2x64xf32>
    %110 = vector.extract_strided_slice %107 {offsets = [0, 0], sizes = [2, 64], strides = [1, 1]} : vector<2x192xf32> to vector<2x64xf32>
    %111 = vector.extract_strided_slice %107 {offsets = [0, 64], sizes = [2, 64], strides = [1, 1]} : vector<2x192xf32> to vector<2x64xf32>
    %112 = vector.extract_strided_slice %107 {offsets = [0, 128], sizes = [2, 64], strides = [1, 1]} : vector<2x192xf32> to vector<2x64xf32>
    %113 = arith.mulf %111, %93 : vector<2x64xf32>
    %114 = arith.mulf %110, %109 : vector<2x64xf32>
    %115 = arith.addf %113, %114 : vector<2x64xf32>
    %116 = math.tanh %115 : vector<2x64xf32>
    %117 = arith.mulf %112, %116 : vector<2x64xf32>
    %c0_34 = arith.constant 0 : index
    %c256 = arith.constant 256 : index
    %118 = vector.load %arg5[%c0_34, %c256] : memref<2x1024xf32, #tpu.memory_space<vmem>>, vector<2x64xf32>
    tpu.vector_store %arg5[%c0_34, %c256], %117 {strides = array<i32>} : memref<2x1024xf32, #tpu.memory_space<vmem>>, vector<2x64xf32>,
    %119 = vector.extract_strided_slice %5 {offsets = [10, 0], sizes = [2, 256], strides = [1, 1]} : vector<32x256xf32> to vector<2x256xf32>
    %cst_35 = arith.constant dense<0.000000e+00> : vector<2x256xf32>
    %120 = tpu.matmul %117, %6, %cst_35 {dimension_numbers = #tpu.dot_dimension_numbers<[1], [0], [0], [1], [0, 0, 1, 1], [], []>} : vector<2x64xf32>, vector<64x256xf32>, vector<2x256xf32> -> vector<2x256xf32>
    %121 = arith.addf %119, %120 : vector<2x256xf32>
    %122 = vector.extract_strided_slice %121 {offsets = [0, 0], sizes = [2, 192], strides = [1, 1]} : vector<2x256xf32> to vector<2x192xf32>
    %cst_36 = arith.constant 5.000000e-01 : f32
    %123 = vector.broadcast %cst_36 : f32 to vector<2x192xf32>
    %124 = arith.mulf %123, %122 : vector<2x192xf32>
    %125 = math.tanh %124 : vector<2x192xf32>
    %cst_37 = arith.constant 1.000000e+00 : f32
    %126 = vector.broadcast %cst_37 : f32 to vector<2x192xf32>
    %127 = arith.addf %125, %126 : vector<2x192xf32>
    %cst_38 = arith.constant 5.000000e-01 : f32
    %128 = vector.broadcast %cst_38 : f32 to vector<2x192xf32>
    %129 = arith.mulf %128, %127 : vector<2x192xf32>
    %130 = vector.extract_strided_slice %121 {offsets = [0, 192], sizes = [2, 64], strides = [1, 1]} : vector<2x256xf32> to vector<2x64xf32>
    %131 = math.tanh %130 : vector<2x64xf32>
    %132 = vector.extract_strided_slice %129 {offsets = [0, 0], sizes = [2, 64], strides = [1, 1]} : vector<2x192xf32> to vector<2x64xf32>
    %133 = vector.extract_strided_slice %129 {offsets = [0, 64], sizes = [2, 64], strides = [1, 1]} : vector<2x192xf32> to vector<2x64xf32>
    %134 = vector.extract_strided_slice %129 {offsets = [0, 128], sizes = [2, 64], strides = [1, 1]} : vector<2x192xf32> to vector<2x64xf32>
    %135 = arith.mulf %133, %115 : vector<2x64xf32>
    %136 = arith.mulf %132, %131 : vector<2x64xf32>
    %137 = arith.addf %135, %136 : vector<2x64xf32>
    %138 = math.tanh %137 : vector<2x64xf32>
    %139 = arith.mulf %134, %138 : vector<2x64xf32>
    %c0_39 = arith.constant 0 : index
    %c320 = arith.constant 320 : index
    %140 = vector.load %arg5[%c0_39, %c320] : memref<2x1024xf32, #tpu.memory_space<vmem>>, vector<2x64xf32>
    tpu.vector_store %arg5[%c0_39, %c320], %139 {strides = array<i32>} : memref<2x1024xf32, #tpu.memory_space<vmem>>, vector<2x64xf32>,
    %141 = vector.extract_strided_slice %5 {offsets = [12, 0], sizes = [2, 256], strides = [1, 1]} : vector<32x256xf32> to vector<2x256xf32>
    %cst_40 = arith.constant dense<0.000000e+00> : vector<2x256xf32>
    %142 = tpu.matmul %139, %6, %cst_40 {dimension_numbers = #tpu.dot_dimension_numbers<[1], [0], [0], [1], [0, 0, 1, 1], [], []>} : vector<2x64xf32>, vector<64x256xf32>, vector<2x256xf32> -> vector<2x256xf32>
    %143 = arith.addf %141, %142 : vector<2x256xf32>
    %144 = vector.extract_strided_slice %143 {offsets = [0, 0], sizes = [2, 192], strides = [1, 1]} : vector<2x256xf32> to vector<2x192xf32>
    %cst_41 = arith.constant 5.000000e-01 : f32
    %145 = vector.broadcast %cst_41 : f32 to vector<2x192xf32>
    %146 = arith.mulf %145, %144 : vector<2x192xf32>
    %147 = math.tanh %146 : vector<2x192xf32>
    %cst_42 = arith.constant 1.000000e+00 : f32
    %148 = vector.broadcast %cst_42 : f32 to vector<2x192xf32>
    %149 = arith.addf %147, %148 : vector<2x192xf32>
    %cst_43 = arith.constant 5.000000e-01 : f32
    %150 = vector.broadcast %cst_43 : f32 to vector<2x192xf32>
    %151 = arith.mulf %150, %149 : vector<2x192xf32>
    %152 = vector.extract_strided_slice %143 {offsets = [0, 192], sizes = [2, 64], strides = [1, 1]} : vector<2x256xf32> to vector<2x64xf32>
    %153 = math.tanh %152 : vector<2x64xf32>
    %154 = vector.extract_strided_slice %151 {offsets = [0, 0], sizes = [2, 64], strides = [1, 1]} : vector<2x192xf32> to vector<2x64xf32>
    %155 = vector.extract_strided_slice %151 {offsets = [0, 64], sizes = [2, 64], strides = [1, 1]} : vector<2x192xf32> to vector<2x64xf32>
    %156 = vector.extract_strided_slice %151 {offsets = [0, 128], sizes = [2, 64], strides = [1, 1]} : vector<2x192xf32> to vector<2x64xf32>
    %157 = arith.mulf %155, %137 : vector<2x64xf32>
    %158 = arith.mulf %154, %153 : vector<2x64xf32>
    %159 = arith.addf %157, %158 : vector<2x64xf32>
    %160 = math.tanh %159 : vector<2x64xf32>
    %161 = arith.mulf %156, %160 : vector<2x64xf32>
    %c0_44 = arith.constant 0 : index
    %c384 = arith.constant 384 : index
    %162 = vector.load %arg5[%c0_44, %c384] : memref<2x1024xf32, #tpu.memory_space<vmem>>, vector<2x64xf32>
    tpu.vector_store %arg5[%c0_44, %c384], %161 {strides = array<i32>} : memref<2x1024xf32, #tpu.memory_space<vmem>>, vector<2x64xf32>,
    %163 = vector.extract_strided_slice %5 {offsets = [14, 0], sizes = [2, 256], strides = [1, 1]} : vector<32x256xf32> to vector<2x256xf32>
    %cst_45 = arith.constant dense<0.000000e+00> : vector<2x256xf32>
    %164 = tpu.matmul %161, %6, %cst_45 {dimension_numbers = #tpu.dot_dimension_numbers<[1], [0], [0], [1], [0, 0, 1, 1], [], []>} : vector<2x64xf32>, vector<64x256xf32>, vector<2x256xf32> -> vector<2x256xf32>
    %165 = arith.addf %163, %164 : vector<2x256xf32>
    %166 = vector.extract_strided_slice %165 {offsets = [0, 0], sizes = [2, 192], strides = [1, 1]} : vector<2x256xf32> to vector<2x192xf32>
    %cst_46 = arith.constant 5.000000e-01 : f32
    %167 = vector.broadcast %cst_46 : f32 to vector<2x192xf32>
    %168 = arith.mulf %167, %166 : vector<2x192xf32>
    %169 = math.tanh %168 : vector<2x192xf32>
    %cst_47 = arith.constant 1.000000e+00 : f32
    %170 = vector.broadcast %cst_47 : f32 to vector<2x192xf32>
    %171 = arith.addf %169, %170 : vector<2x192xf32>
    %cst_48 = arith.constant 5.000000e-01 : f32
    %172 = vector.broadcast %cst_48 : f32 to vector<2x192xf32>
    %173 = arith.mulf %172, %171 : vector<2x192xf32>
    %174 = vector.extract_strided_slice %165 {offsets = [0, 192], sizes = [2, 64], strides = [1, 1]} : vector<2x256xf32> to vector<2x64xf32>
    %175 = math.tanh %174 : vector<2x64xf32>
    %176 = vector.extract_strided_slice %173 {offsets = [0, 0], sizes = [2, 64], strides = [1, 1]} : vector<2x192xf32> to vector<2x64xf32>
    %177 = vector.extract_strided_slice %173 {offsets = [0, 64], sizes = [2, 64], strides = [1, 1]} : vector<2x192xf32> to vector<2x64xf32>
    %178 = vector.extract_strided_slice %173 {offsets = [0, 128], sizes = [2, 64], strides = [1, 1]} : vector<2x192xf32> to vector<2x64xf32>
    %179 = arith.mulf %177, %159 : vector<2x64xf32>
    %180 = arith.mulf %176, %175 : vector<2x64xf32>
    %181 = arith.addf %179, %180 : vector<2x64xf32>
    %182 = math.tanh %181 : vector<2x64xf32>
    %183 = arith.mulf %178, %182 : vector<2x64xf32>
    %c0_49 = arith.constant 0 : index
    %c448 = arith.constant 448 : index
    %184 = vector.load %arg5[%c0_49, %c448] : memref<2x1024xf32, #tpu.memory_space<vmem>>, vector<2x64xf32>
    tpu.vector_store %arg5[%c0_49, %c448], %183 {strides = array<i32>} : memref<2x1024xf32, #tpu.memory_space<vmem>>, vector<2x64xf32>,
    %185 = vector.extract_strided_slice %5 {offsets = [16, 0], sizes = [2, 256], strides = [1, 1]} : vector<32x256xf32> to vector<2x256xf32>
    %cst_50 = arith.constant dense<0.000000e+00> : vector<2x256xf32>
    %186 = tpu.matmul %183, %6, %cst_50 {dimension_numbers = #tpu.dot_dimension_numbers<[1], [0], [0], [1], [0, 0, 1, 1], [], []>} : vector<2x64xf32>, vector<64x256xf32>, vector<2x256xf32> -> vector<2x256xf32>
    %187 = arith.addf %185, %186 : vector<2x256xf32>
    %188 = vector.extract_strided_slice %187 {offsets = [0, 0], sizes = [2, 192], strides = [1, 1]} : vector<2x256xf32> to vector<2x192xf32>
    %cst_51 = arith.constant 5.000000e-01 : f32
    %189 = vector.broadcast %cst_51 : f32 to vector<2x192xf32>
    %190 = arith.mulf %189, %188 : vector<2x192xf32>
    %191 = math.tanh %190 : vector<2x192xf32>
    %cst_52 = arith.constant 1.000000e+00 : f32
    %192 = vector.broadcast %cst_52 : f32 to vector<2x192xf32>
    %193 = arith.addf %191, %192 : vector<2x192xf32>
    %cst_53 = arith.constant 5.000000e-01 : f32
    %194 = vector.broadcast %cst_53 : f32 to vector<2x192xf32>
    %195 = arith.mulf %194, %193 : vector<2x192xf32>
    %196 = vector.extract_strided_slice %187 {offsets = [0, 192], sizes = [2, 64], strides = [1, 1]} : vector<2x256xf32> to vector<2x64xf32>
    %197 = math.tanh %196 : vector<2x64xf32>
    %198 = vector.extract_strided_slice %195 {offsets = [0, 0], sizes = [2, 64], strides = [1, 1]} : vector<2x192xf32> to vector<2x64xf32>
    %199 = vector.extract_strided_slice %195 {offsets = [0, 64], sizes = [2, 64], strides = [1, 1]} : vector<2x192xf32> to vector<2x64xf32>
    %200 = vector.extract_strided_slice %195 {offsets = [0, 128], sizes = [2, 64], strides = [1, 1]} : vector<2x192xf32> to vector<2x64xf32>
    %201 = arith.mulf %199, %181 : vector<2x64xf32>
    %202 = arith.mulf %198, %197 : vector<2x64xf32>
    %203 = arith.addf %201, %202 : vector<2x64xf32>
    %204 = math.tanh %203 : vector<2x64xf32>
    %205 = arith.mulf %200, %204 : vector<2x64xf32>
    %c0_54 = arith.constant 0 : index
    %c512 = arith.constant 512 : index
    %206 = vector.load %arg5[%c0_54, %c512] : memref<2x1024xf32, #tpu.memory_space<vmem>>, vector<2x64xf32>
    tpu.vector_store %arg5[%c0_54, %c512], %205 {strides = array<i32>} : memref<2x1024xf32, #tpu.memory_space<vmem>>, vector<2x64xf32>,
    %207 = vector.extract_strided_slice %5 {offsets = [18, 0], sizes = [2, 256], strides = [1, 1]} : vector<32x256xf32> to vector<2x256xf32>
    %cst_55 = arith.constant dense<0.000000e+00> : vector<2x256xf32>
    %208 = tpu.matmul %205, %6, %cst_55 {dimension_numbers = #tpu.dot_dimension_numbers<[1], [0], [0], [1], [0, 0, 1, 1], [], []>} : vector<2x64xf32>, vector<64x256xf32>, vector<2x256xf32> -> vector<2x256xf32>
    %209 = arith.addf %207, %208 : vector<2x256xf32>
    %210 = vector.extract_strided_slice %209 {offsets = [0, 0], sizes = [2, 192], strides = [1, 1]} : vector<2x256xf32> to vector<2x192xf32>
    %cst_56 = arith.constant 5.000000e-01 : f32
    %211 = vector.broadcast %cst_56 : f32 to vector<2x192xf32>
    %212 = arith.mulf %211, %210 : vector<2x192xf32>
    %213 = math.tanh %212 : vector<2x192xf32>
    %cst_57 = arith.constant 1.000000e+00 : f32
    %214 = vector.broadcast %cst_57 : f32 to vector<2x192xf32>
    %215 = arith.addf %213, %214 : vector<2x192xf32>
    %cst_58 = arith.constant 5.000000e-01 : f32
    %216 = vector.broadcast %cst_58 : f32 to vector<2x192xf32>
    %217 = arith.mulf %216, %215 : vector<2x192xf32>
    %218 = vector.extract_strided_slice %209 {offsets = [0, 192], sizes = [2, 64], strides = [1, 1]} : vector<2x256xf32> to vector<2x64xf32>
    %219 = math.tanh %218 : vector<2x64xf32>
    %220 = vector.extract_strided_slice %217 {offsets = [0, 0], sizes = [2, 64], strides = [1, 1]} : vector<2x192xf32> to vector<2x64xf32>
    %221 = vector.extract_strided_slice %217 {offsets = [0, 64], sizes = [2, 64], strides = [1, 1]} : vector<2x192xf32> to vector<2x64xf32>
    %222 = vector.extract_strided_slice %217 {offsets = [0, 128], sizes = [2, 64], strides = [1, 1]} : vector<2x192xf32> to vector<2x64xf32>
    %223 = arith.mulf %221, %203 : vector<2x64xf32>
    %224 = arith.mulf %220, %219 : vector<2x64xf32>
    %225 = arith.addf %223, %224 : vector<2x64xf32>
    %226 = math.tanh %225 : vector<2x64xf32>
    %227 = arith.mulf %222, %226 : vector<2x64xf32>
    %c0_59 = arith.constant 0 : index
    %c576 = arith.constant 576 : index
    %228 = vector.load %arg5[%c0_59, %c576] : memref<2x1024xf32, #tpu.memory_space<vmem>>, vector<2x64xf32>
    tpu.vector_store %arg5[%c0_59, %c576], %227 {strides = array<i32>} : memref<2x1024xf32, #tpu.memory_space<vmem>>, vector<2x64xf32>,
    %229 = vector.extract_strided_slice %5 {offsets = [20, 0], sizes = [2, 256], strides = [1, 1]} : vector<32x256xf32> to vector<2x256xf32>
    %cst_60 = arith.constant dense<0.000000e+00> : vector<2x256xf32>
    %230 = tpu.matmul %227, %6, %cst_60 {dimension_numbers = #tpu.dot_dimension_numbers<[1], [0], [0], [1], [0, 0, 1, 1], [], []>} : vector<2x64xf32>, vector<64x256xf32>, vector<2x256xf32> -> vector<2x256xf32>
    %231 = arith.addf %229, %230 : vector<2x256xf32>
    %232 = vector.extract_strided_slice %231 {offsets = [0, 0], sizes = [2, 192], strides = [1, 1]} : vector<2x256xf32> to vector<2x192xf32>
    %cst_61 = arith.constant 5.000000e-01 : f32
    %233 = vector.broadcast %cst_61 : f32 to vector<2x192xf32>
    %234 = arith.mulf %233, %232 : vector<2x192xf32>
    %235 = math.tanh %234 : vector<2x192xf32>
    %cst_62 = arith.constant 1.000000e+00 : f32
    %236 = vector.broadcast %cst_62 : f32 to vector<2x192xf32>
    %237 = arith.addf %235, %236 : vector<2x192xf32>
    %cst_63 = arith.constant 5.000000e-01 : f32
    %238 = vector.broadcast %cst_63 : f32 to vector<2x192xf32>
    %239 = arith.mulf %238, %237 : vector<2x192xf32>
    %240 = vector.extract_strided_slice %231 {offsets = [0, 192], sizes = [2, 64], strides = [1, 1]} : vector<2x256xf32> to vector<2x64xf32>
    %241 = math.tanh %240 : vector<2x64xf32>
    %242 = vector.extract_strided_slice %239 {offsets = [0, 0], sizes = [2, 64], strides = [1, 1]} : vector<2x192xf32> to vector<2x64xf32>
    %243 = vector.extract_strided_slice %239 {offsets = [0, 64], sizes = [2, 64], strides = [1, 1]} : vector<2x192xf32> to vector<2x64xf32>
    %244 = vector.extract_strided_slice %239 {offsets = [0, 128], sizes = [2, 64], strides = [1, 1]} : vector<2x192xf32> to vector<2x64xf32>
    %245 = arith.mulf %243, %225 : vector<2x64xf32>
    %246 = arith.mulf %242, %241 : vector<2x64xf32>
    %247 = arith.addf %245, %246 : vector<2x64xf32>
    %248 = math.tanh %247 : vector<2x64xf32>
    %249 = arith.mulf %244, %248 : vector<2x64xf32>
    %c0_64 = arith.constant 0 : index
    %c640 = arith.constant 640 : index
    %250 = vector.load %arg5[%c0_64, %c640] : memref<2x1024xf32, #tpu.memory_space<vmem>>, vector<2x64xf32>
    tpu.vector_store %arg5[%c0_64, %c640], %249 {strides = array<i32>} : memref<2x1024xf32, #tpu.memory_space<vmem>>, vector<2x64xf32>,
    %251 = vector.extract_strided_slice %5 {offsets = [22, 0], sizes = [2, 256], strides = [1, 1]} : vector<32x256xf32> to vector<2x256xf32>
    %cst_65 = arith.constant dense<0.000000e+00> : vector<2x256xf32>
    %252 = tpu.matmul %249, %6, %cst_65 {dimension_numbers = #tpu.dot_dimension_numbers<[1], [0], [0], [1], [0, 0, 1, 1], [], []>} : vector<2x64xf32>, vector<64x256xf32>, vector<2x256xf32> -> vector<2x256xf32>
    %253 = arith.addf %251, %252 : vector<2x256xf32>
    %254 = vector.extract_strided_slice %253 {offsets = [0, 0], sizes = [2, 192], strides = [1, 1]} : vector<2x256xf32> to vector<2x192xf32>
    %cst_66 = arith.constant 5.000000e-01 : f32
    %255 = vector.broadcast %cst_66 : f32 to vector<2x192xf32>
    %256 = arith.mulf %255, %254 : vector<2x192xf32>
    %257 = math.tanh %256 : vector<2x192xf32>
    %cst_67 = arith.constant 1.000000e+00 : f32
    %258 = vector.broadcast %cst_67 : f32 to vector<2x192xf32>
    %259 = arith.addf %257, %258 : vector<2x192xf32>
    %cst_68 = arith.constant 5.000000e-01 : f32
    %260 = vector.broadcast %cst_68 : f32 to vector<2x192xf32>
    %261 = arith.mulf %260, %259 : vector<2x192xf32>
    %262 = vector.extract_strided_slice %253 {offsets = [0, 192], sizes = [2, 64], strides = [1, 1]} : vector<2x256xf32> to vector<2x64xf32>
    %263 = math.tanh %262 : vector<2x64xf32>
    %264 = vector.extract_strided_slice %261 {offsets = [0, 0], sizes = [2, 64], strides = [1, 1]} : vector<2x192xf32> to vector<2x64xf32>
    %265 = vector.extract_strided_slice %261 {offsets = [0, 64], sizes = [2, 64], strides = [1, 1]} : vector<2x192xf32> to vector<2x64xf32>
    %266 = vector.extract_strided_slice %261 {offsets = [0, 128], sizes = [2, 64], strides = [1, 1]} : vector<2x192xf32> to vector<2x64xf32>
    %267 = arith.mulf %265, %247 : vector<2x64xf32>
    %268 = arith.mulf %264, %263 : vector<2x64xf32>
    %269 = arith.addf %267, %268 : vector<2x64xf32>
    %270 = math.tanh %269 : vector<2x64xf32>
    %271 = arith.mulf %266, %270 : vector<2x64xf32>
    %c0_69 = arith.constant 0 : index
    %c704 = arith.constant 704 : index
    %272 = vector.load %arg5[%c0_69, %c704] : memref<2x1024xf32, #tpu.memory_space<vmem>>, vector<2x64xf32>
    tpu.vector_store %arg5[%c0_69, %c704], %271 {strides = array<i32>} : memref<2x1024xf32, #tpu.memory_space<vmem>>, vector<2x64xf32>,
    %273 = vector.extract_strided_slice %5 {offsets = [24, 0], sizes = [2, 256], strides = [1, 1]} : vector<32x256xf32> to vector<2x256xf32>
    %cst_70 = arith.constant dense<0.000000e+00> : vector<2x256xf32>
    %274 = tpu.matmul %271, %6, %cst_70 {dimension_numbers = #tpu.dot_dimension_numbers<[1], [0], [0], [1], [0, 0, 1, 1], [], []>} : vector<2x64xf32>, vector<64x256xf32>, vector<2x256xf32> -> vector<2x256xf32>
    %275 = arith.addf %273, %274 : vector<2x256xf32>
    %276 = vector.extract_strided_slice %275 {offsets = [0, 0], sizes = [2, 192], strides = [1, 1]} : vector<2x256xf32> to vector<2x192xf32>
    %cst_71 = arith.constant 5.000000e-01 : f32
    %277 = vector.broadcast %cst_71 : f32 to vector<2x192xf32>
    %278 = arith.mulf %277, %276 : vector<2x192xf32>
    %279 = math.tanh %278 : vector<2x192xf32>
    %cst_72 = arith.constant 1.000000e+00 : f32
    %280 = vector.broadcast %cst_72 : f32 to vector<2x192xf32>
    %281 = arith.addf %279, %280 : vector<2x192xf32>
    %cst_73 = arith.constant 5.000000e-01 : f32
    %282 = vector.broadcast %cst_73 : f32 to vector<2x192xf32>
    %283 = arith.mulf %282, %281 : vector<2x192xf32>
    %284 = vector.extract_strided_slice %275 {offsets = [0, 192], sizes = [2, 64], strides = [1, 1]} : vector<2x256xf32> to vector<2x64xf32>
    %285 = math.tanh %284 : vector<2x64xf32>
    %286 = vector.extract_strided_slice %283 {offsets = [0, 0], sizes = [2, 64], strides = [1, 1]} : vector<2x192xf32> to vector<2x64xf32>
    %287 = vector.extract_strided_slice %283 {offsets = [0, 64], sizes = [2, 64], strides = [1, 1]} : vector<2x192xf32> to vector<2x64xf32>
    %288 = vector.extract_strided_slice %283 {offsets = [0, 128], sizes = [2, 64], strides = [1, 1]} : vector<2x192xf32> to vector<2x64xf32>
    %289 = arith.mulf %287, %269 : vector<2x64xf32>
    %290 = arith.mulf %286, %285 : vector<2x64xf32>
    %291 = arith.addf %289, %290 : vector<2x64xf32>
    %292 = math.tanh %291 : vector<2x64xf32>
    %293 = arith.mulf %288, %292 : vector<2x64xf32>
    %c0_74 = arith.constant 0 : index
    %c768 = arith.constant 768 : index
    %294 = vector.load %arg5[%c0_74, %c768] : memref<2x1024xf32, #tpu.memory_space<vmem>>, vector<2x64xf32>
    tpu.vector_store %arg5[%c0_74, %c768], %293 {strides = array<i32>} : memref<2x1024xf32, #tpu.memory_space<vmem>>, vector<2x64xf32>,
    %295 = vector.extract_strided_slice %5 {offsets = [26, 0], sizes = [2, 256], strides = [1, 1]} : vector<32x256xf32> to vector<2x256xf32>
    %cst_75 = arith.constant dense<0.000000e+00> : vector<2x256xf32>
    %296 = tpu.matmul %293, %6, %cst_75 {dimension_numbers = #tpu.dot_dimension_numbers<[1], [0], [0], [1], [0, 0, 1, 1], [], []>} : vector<2x64xf32>, vector<64x256xf32>, vector<2x256xf32> -> vector<2x256xf32>
    %297 = arith.addf %295, %296 : vector<2x256xf32>
    %298 = vector.extract_strided_slice %297 {offsets = [0, 0], sizes = [2, 192], strides = [1, 1]} : vector<2x256xf32> to vector<2x192xf32>
    %cst_76 = arith.constant 5.000000e-01 : f32
    %299 = vector.broadcast %cst_76 : f32 to vector<2x192xf32>
    %300 = arith.mulf %299, %298 : vector<2x192xf32>
    %301 = math.tanh %300 : vector<2x192xf32>
    %cst_77 = arith.constant 1.000000e+00 : f32
    %302 = vector.broadcast %cst_77 : f32 to vector<2x192xf32>
    %303 = arith.addf %301, %302 : vector<2x192xf32>
    %cst_78 = arith.constant 5.000000e-01 : f32
    %304 = vector.broadcast %cst_78 : f32 to vector<2x192xf32>
    %305 = arith.mulf %304, %303 : vector<2x192xf32>
    %306 = vector.extract_strided_slice %297 {offsets = [0, 192], sizes = [2, 64], strides = [1, 1]} : vector<2x256xf32> to vector<2x64xf32>
    %307 = math.tanh %306 : vector<2x64xf32>
    %308 = vector.extract_strided_slice %305 {offsets = [0, 0], sizes = [2, 64], strides = [1, 1]} : vector<2x192xf32> to vector<2x64xf32>
    %309 = vector.extract_strided_slice %305 {offsets = [0, 64], sizes = [2, 64], strides = [1, 1]} : vector<2x192xf32> to vector<2x64xf32>
    %310 = vector.extract_strided_slice %305 {offsets = [0, 128], sizes = [2, 64], strides = [1, 1]} : vector<2x192xf32> to vector<2x64xf32>
    %311 = arith.mulf %309, %291 : vector<2x64xf32>
    %312 = arith.mulf %308, %307 : vector<2x64xf32>
    %313 = arith.addf %311, %312 : vector<2x64xf32>
    %314 = math.tanh %313 : vector<2x64xf32>
    %315 = arith.mulf %310, %314 : vector<2x64xf32>
    %c0_79 = arith.constant 0 : index
    %c832 = arith.constant 832 : index
    %316 = vector.load %arg5[%c0_79, %c832] : memref<2x1024xf32, #tpu.memory_space<vmem>>, vector<2x64xf32>
    tpu.vector_store %arg5[%c0_79, %c832], %315 {strides = array<i32>} : memref<2x1024xf32, #tpu.memory_space<vmem>>, vector<2x64xf32>,
    %317 = vector.extract_strided_slice %5 {offsets = [28, 0], sizes = [2, 256], strides = [1, 1]} : vector<32x256xf32> to vector<2x256xf32>
    %cst_80 = arith.constant dense<0.000000e+00> : vector<2x256xf32>
    %318 = tpu.matmul %315, %6, %cst_80 {dimension_numbers = #tpu.dot_dimension_numbers<[1], [0], [0], [1], [0, 0, 1, 1], [], []>} : vector<2x64xf32>, vector<64x256xf32>, vector<2x256xf32> -> vector<2x256xf32>
    %319 = arith.addf %317, %318 : vector<2x256xf32>
    %320 = vector.extract_strided_slice %319 {offsets = [0, 0], sizes = [2, 192], strides = [1, 1]} : vector<2x256xf32> to vector<2x192xf32>
    %cst_81 = arith.constant 5.000000e-01 : f32
    %321 = vector.broadcast %cst_81 : f32 to vector<2x192xf32>
    %322 = arith.mulf %321, %320 : vector<2x192xf32>
    %323 = math.tanh %322 : vector<2x192xf32>
    %cst_82 = arith.constant 1.000000e+00 : f32
    %324 = vector.broadcast %cst_82 : f32 to vector<2x192xf32>
    %325 = arith.addf %323, %324 : vector<2x192xf32>
    %cst_83 = arith.constant 5.000000e-01 : f32
    %326 = vector.broadcast %cst_83 : f32 to vector<2x192xf32>
    %327 = arith.mulf %326, %325 : vector<2x192xf32>
    %328 = vector.extract_strided_slice %319 {offsets = [0, 192], sizes = [2, 64], strides = [1, 1]} : vector<2x256xf32> to vector<2x64xf32>
    %329 = math.tanh %328 : vector<2x64xf32>
    %330 = vector.extract_strided_slice %327 {offsets = [0, 0], sizes = [2, 64], strides = [1, 1]} : vector<2x192xf32> to vector<2x64xf32>
    %331 = vector.extract_strided_slice %327 {offsets = [0, 64], sizes = [2, 64], strides = [1, 1]} : vector<2x192xf32> to vector<2x64xf32>
    %332 = vector.extract_strided_slice %327 {offsets = [0, 128], sizes = [2, 64], strides = [1, 1]} : vector<2x192xf32> to vector<2x64xf32>
    %333 = arith.mulf %331, %313 : vector<2x64xf32>
    %334 = arith.mulf %330, %329 : vector<2x64xf32>
    %335 = arith.addf %333, %334 : vector<2x64xf32>
    %336 = math.tanh %335 : vector<2x64xf32>
    %337 = arith.mulf %332, %336 : vector<2x64xf32>
    %c0_84 = arith.constant 0 : index
    %c896 = arith.constant 896 : index
    %338 = vector.load %arg5[%c0_84, %c896] : memref<2x1024xf32, #tpu.memory_space<vmem>>, vector<2x64xf32>
    tpu.vector_store %arg5[%c0_84, %c896], %337 {strides = array<i32>} : memref<2x1024xf32, #tpu.memory_space<vmem>>, vector<2x64xf32>,
    %339 = vector.extract_strided_slice %5 {offsets = [30, 0], sizes = [2, 256], strides = [1, 1]} : vector<32x256xf32> to vector<2x256xf32>
    %cst_85 = arith.constant dense<0.000000e+00> : vector<2x256xf32>
    %340 = tpu.matmul %337, %6, %cst_85 {dimension_numbers = #tpu.dot_dimension_numbers<[1], [0], [0], [1], [0, 0, 1, 1], [], []>} : vector<2x64xf32>, vector<64x256xf32>, vector<2x256xf32> -> vector<2x256xf32>
    %341 = arith.addf %339, %340 : vector<2x256xf32>
    %342 = vector.extract_strided_slice %341 {offsets = [0, 0], sizes = [2, 192], strides = [1, 1]} : vector<2x256xf32> to vector<2x192xf32>
    %cst_86 = arith.constant 5.000000e-01 : f32
    %343 = vector.broadcast %cst_86 : f32 to vector<2x192xf32>
    %344 = arith.mulf %343, %342 : vector<2x192xf32>
    %345 = math.tanh %344 : vector<2x192xf32>
    %cst_87 = arith.constant 1.000000e+00 : f32
    %346 = vector.broadcast %cst_87 : f32 to vector<2x192xf32>
    %347 = arith.addf %345, %346 : vector<2x192xf32>
    %cst_88 = arith.constant 5.000000e-01 : f32
    %348 = vector.broadcast %cst_88 : f32 to vector<2x192xf32>
    %349 = arith.mulf %348, %347 : vector<2x192xf32>
    %350 = vector.extract_strided_slice %341 {offsets = [0, 192], sizes = [2, 64], strides = [1, 1]} : vector<2x256xf32> to vector<2x64xf32>
    %351 = math.tanh %350 : vector<2x64xf32>
    %352 = vector.extract_strided_slice %349 {offsets = [0, 0], sizes = [2, 64], strides = [1, 1]} : vector<2x192xf32> to vector<2x64xf32>
    %353 = vector.extract_strided_slice %349 {offsets = [0, 64], sizes = [2, 64], strides = [1, 1]} : vector<2x192xf32> to vector<2x64xf32>
    %354 = vector.extract_strided_slice %349 {offsets = [0, 128], sizes = [2, 64], strides = [1, 1]} : vector<2x192xf32> to vector<2x64xf32>
    %355 = arith.mulf %353, %335 : vector<2x64xf32>
    %356 = arith.mulf %352, %351 : vector<2x64xf32>
    %357 = arith.addf %355, %356 : vector<2x64xf32>
    %358 = math.tanh %357 : vector<2x64xf32>
    %359 = arith.mulf %354, %358 : vector<2x64xf32>
    %c0_89 = arith.constant 0 : index
    %c960 = arith.constant 960 : index
    %360 = vector.load %arg5[%c0_89, %c960] : memref<2x1024xf32, #tpu.memory_space<vmem>>, vector<2x64xf32>
    tpu.vector_store %arg5[%c0_89, %c960], %359 {strides = array<i32>} : memref<2x1024xf32, #tpu.memory_space<vmem>>, vector<2x64xf32>,
    return
  }
  func.func @transform_0(%arg0: i32) -> (i32, i32) {
    %c0_i32 = arith.constant 0 : i32
    %c0_i32_0 = arith.constant 0 : i32
    %c0_i32_1 = arith.constant 0 : i32
    return %c0_i32, %c0_i32_0 : i32, i32
  }
  func.func @transform_1(%arg0: i32) -> (i32, i32) {
    %c0_i32 = arith.constant 0 : i32
    %c0_i32_0 = arith.constant 0 : i32
    %c0_i32_1 = arith.constant 0 : i32
    return %c0_i32, %c0_i32_0 : i32, i32
  }
  func.func @transform_2(%arg0: i32) -> (i32, i32) {
    %c0_i32 = arith.constant 0 : i32
    %c0_i32_0 = arith.constant 0 : i32
    %c0_i32_1 = arith.constant 0 : i32
    return %c0_i32, %c0_i32_0 : i32, i32
  }
  func.func @transform_3(%arg0: i32) -> (i32, i32) {
    %c0_i32 = arith.constant 0 : i32
    %c0_i32_0 = arith.constant 0 : i32
    %c0_i32_1 = arith.constant 0 : i32
    return %c0_i32, %c0_i32_0 : i32, i32
  }
  func.func @transform_4(%arg0: i32) -> (i32, i32) {
    %c0_i32 = arith.constant 0 : i32
    %c0_i32_0 = arith.constant 0 : i32
    %c0_i32_1 = arith.constant 0 : i32
    return %c0_i32, %c0_i32_0 : i32, i32
  }
}

</mosaic_0001>

<bundles_post_ra>
// kernel: tpu_custom_call.1
= control target key start
LH: loop header
LB: loop body
LE: loop exit
PB: predicated region body
PF: predicated region fallthrough
CT: control target
= control target key end

     0   :  { %9 = vsyncpa [#allocation3], 0  ;;  %s3003_s0 = inlined_call_operand.hbm [shape: f32[32,64], index: 0, kind: input, shape index: {}]   ;;  %s3004_s1 = inlined_call_operand.hbm [shape: f32[64,256], index: 1, kind: input, shape index: {}]   ;;  %s3005_s2 = inlined_call_operand.hbm [shape: f32[64,256], index: 2, kind: input, shape index: {}]   ;;  %s3006_s3 = inlined_call_operand.vmem [shape: f32[1,256], index: 3, kind: input, shape index: {}]   ;;  %s3007_s4 = inlined_call_operand.hbm [shape: f32[2,1024], index: 4, kind: output, shape index: {}]  }
   0x1   :  { %10 = vsyncpa [#allocation6], 0 }
   0x2   :  { %11 = vsyncpa [#allocation4], 0  ;;  %s2392_s15 = smov [#allocation5]  }
   0x3   :  { %s29_s16 = sshll.u32 %s2392_s15, 4  ;;  %s30_s16 = int_to_ptr.vmem [resolvable:$true] %s29_s16 }
   0x4   :  { %s2314_s17 = scalar_lea.vmem %s30_s16, 2048  ;;  %p2319_p1 = scmp.lt.s32.totalorder %s30_s16, %s30_s16 }
   0x5   :  { %p2315_p0 = scmp.ne.s32.totalorder %s30_s16, %s2314_s17  ;;  %p2320_p2 = scmp.lt.s32.totalorder %s2314_s17, %s2314_s17 }
   0x7   :  { %p2321_p3 = por %p2320_p2, %p2319_p1 }
   0x9   :  { %p2322_p4 = pnand %p2321_p3, %p2315_p0 }
   0xb   :  { %2325 = shalt.err (!%p2322_p4)
}
   0xc   :  { %s2393_s18 = smov 256   ;;  %s2394_s19 = smov 16  }
   0xd   :  { %35 = dma.hbm_to_vmem [thread:$0]  %s3004_s1, 2048, %s30_s16, [#allocation6], %s2393_s18, %s2393_s18, %s2394_s19  }
   0xe   :  { %s2395_s22 = smov [#allocation2]  }
   0xf   :  { %s17_s23 = sshll.u32 %s2395_s22, 4  ;;  %s18_s23 = int_to_ptr.vmem [resolvable:$true] %s17_s23 }
  0x10   :  { %s2334_s24 = scalar_lea.vmem %s18_s23, 512  ;;  %p2339_p6 = scmp.lt.s32.totalorder %s18_s23, %s18_s23 }
  0x11   :  { %p2335_p5 = scmp.ne.s32.totalorder %s18_s23, %s2334_s24  ;;  %p2340_p7 = scmp.lt.s32.totalorder %s2334_s24, %s2334_s24 }
  0x13   :  { %p2341_p8 = por %p2340_p7, %p2339_p6 }
  0x15   :  { %p2342_p9 = pnand %p2341_p8, %p2335_p5 }
  0x17   :  { %2345 = shalt.err (!%p2342_p9)
}
  0x18   :  { %s2396_s25 = smov 128   ;;  %s2397_s26 = smov 8  }
  0x19   :  { %23 = dma.hbm_to_vmem [thread:$0]  %s3003_s0, 512, %s18_s23, [#allocation3], %s2396_s25, %s2396_s25, %s2397_s26  }
  0x1a   :  { %s2398_s29 = smov [#allocation7]  }
  0x1b   :  { %s41_s30 = sshll.u32 %s2398_s29, 4  ;;  %s42_s30 = int_to_ptr.vmem [resolvable:$true] %s41_s30 }
  0x1c   :  { %s2354_s1 = scalar_lea.vmem %s42_s30, 2048  ;;  %p2359_p11 = scmp.lt.s32.totalorder %s42_s30, %s42_s30 }
  0x1d   :  { %p2355_p10 = scmp.ne.s32.totalorder %s42_s30, %s2354_s1  ;;  %p2360_p12 = scmp.lt.s32.totalorder %s2354_s1, %s2354_s1 }
  0x1f   :  { %p2361_p13 = por %p2360_p12, %p2359_p11 }
  0x21   :  { %p2362_p0 = pnand %p2361_p13, %p2355_p10 }
  0x23   :  { %2365 = shalt.err (!%p2362_p0)
}
  0x24   :  { %47 = dma.hbm_to_vmem [thread:$0]  %s3005_s2, 2048, %s42_s30, [#allocation6], %s2393_s18, %s2393_s18, %s2394_s19  }
  0x25   :  { %2386 = dma.done.wait [#allocation3], 512  }
  0x26   :  { %2387 = vsyncadd [#allocation3], 4294966784 }
  0x27   :  { %2388 = dma.done.wait [#allocation6], 4096  }
  0x28   :  { %2389 = vsyncadd [#allocation6], 4294963200  ;;  %v2399_v0 = vmov 0.0   ;;  %v78_v1 = vld [vmem:[#allocation5 + $0x78] sm:$0xff]  ;;  %v77_v3 = vld [vmem:[#allocation5 + $0x70] sm:$0xff]  ;;  %vm91_vm0 = vcmask 523264   ;;  %v81_v34 = vlaneseq }
  0x29   :  { %168 = vmatprep.mubr.f32.mxu0 %v2399_v0  ;;  %276 = vmatprep.mubr.f32.mxu1 %v2399_v0  ;;  %v2439_v2 = vld [vmem:[#allocation7 + $0x78] sm:$0xff]  ;;  %v2442_v4 = vld [vmem:[#allocation7 + $0x70] sm:$0xff]  ;;  %v76_v5 = vld [vmem:[#allocation5 + $0x68] sm:$0xff]  ;;  %s2400_s7 = smov 64   ;;  %vm311_vm1 = vcmask 517120   ;;  %vm436_vm2 = vcmask 1041920  }
  0x2a   :  { %120 = vmatprep.subr.mxu0 %v78_v1  ;;  %228 = vmatprep.subr.mxu1 %v2439_v2  ;;  %v2444_v6 = vld [vmem:[#allocation7 + $0x68] sm:$0xff]  ;;  %v75_v7 = vld [vmem:[#allocation5 + $0x60] sm:$0xff]  ;;  %v74_v9 = vld [vmem:[#allocation5 + $0x58] sm:$0xff]  ;;  %v2525_v35 = vshrl.u32 %v81_v34, 7 }
  0x2b   :  { %121 = vmatpush1.msra.mxu0 %v77_v3  ;;  %229 = vmatpush1.msra.mxu1 %v2442_v4  ;;  %v2447_v8 = vld [vmem:[#allocation7 + $0x60] sm:$0xff]  ;;  %v2450_v10 = vld [vmem:[#allocation7 + $0x58] sm:$0xff]  ;;  %v73_v11 = vld [vmem:[#allocation5 + $0x50] sm:$0xff] }
  0x2c   :  { %122 = vmatprep.subr.mxu0 %v76_v5  ;;  %230 = vmatprep.subr.mxu1 %v2444_v6  ;;  %v2452_v12 = vld [vmem:[#allocation7 + $0x50] sm:$0xff]  ;;  %v72_v13 = vld [vmem:[#allocation5 + $0x48] sm:$0xff]  ;;  %v71_v15 = vld [vmem:[#allocation5 + $0x40] sm:$0xff]  ;;  %v87_v36 = vsub.s32 1, %v2525_v35  ;;  %v83_v46 = vsub.s32 0, %v2525_v35 }
  0x2d   :  { %123 = vmatpush1.msra.mxu0 %v75_v7  ;;  %231 = vmatpush1.msra.mxu1 %v2447_v8  ;;  %v2455_v14 = vld [vmem:[#allocation7 + $0x48] sm:$0xff]  ;;  %v2458_v16 = vld [vmem:[#allocation7 + $0x40] sm:$0xff]  ;;  %v70_v17 = vld [vmem:[#allocation5 + $0x38] sm:$0xff] }
  0x2e   :  { %124 = vmatprep.subr.mxu0 %v74_v9  ;;  %232 = vmatprep.subr.mxu1 %v2450_v10  ;;  %v2461_v18 = vld [vmem:[#allocation7 + $0x38] sm:$0xff]  ;;  %v69_v19 = vld [vmem:[#allocation5 + $0x30] sm:$0xff]  ;;  %v68_v21 = vld [vmem:[#allocation5 + $0x28] sm:$0xff] }
  0x2f   :  { %125 = vmatpush1.msra.mxu0 %v73_v11  ;;  %233 = vmatpush1.msra.mxu1 %v2452_v12  ;;  %v2464_v20 = vld [vmem:[#allocation7 + $0x30] sm:$0xff]  ;;  %v2467_v22 = vld [vmem:[#allocation7 + $0x28] sm:$0xff]  ;;  %v67_v23 = vld [vmem:[#allocation5 + $0x20] sm:$0xff] }
  0x30   :  { %126 = vmatprep.subr.mxu0 %v72_v13  ;;  %234 = vmatprep.subr.mxu1 %v2455_v14  ;;  %v2470_v24 = vld [vmem:[#allocation7 + $0x20] sm:$0xff]  ;;  %v66_v25 = vld [vmem:[#allocation5 + $0x18] sm:$0xff]  ;;  %v65_v27 = vld [vmem:[#allocation5 + $0x10] sm:$0xff] }
  0x31   :  { %127 = vmatpush1.msra.mxu0 %v71_v15  ;;  %235 = vmatpush1.msra.mxu1 %v2458_v16  ;;  %v2473_v26 = vld [vmem:[#allocation7 + $0x18] sm:$0xff]  ;;  %v2476_v28 = vld [vmem:[#allocation7 + $0x10] sm:$0xff]  ;;  %v64_v29 = vld [vmem:[#allocation5 + $0x8] sm:$0xff] }
  0x32   :  { %128 = vmatprep.subr.mxu0 %v70_v17  ;;  %236 = vmatprep.subr.mxu1 %v2461_v18  ;;  %v2479_v30 = vld [vmem:[#allocation7 + $0x8] sm:$0xff]  ;;  %v63_v31 = vld [vmem:[#allocation5] sm:$0xff]  ;;  %v61_v57 = vld [vmem:[#allocation2 + $0x10] sm:$0xff] }
  0x33   :  { %129 = vmatpush1.msra.mxu0 %v69_v19  ;;  %237 = vmatpush1.msra.mxu1 %v2464_v20  ;;  %v2482_v32 = vld [vmem:[#allocation7] sm:$0xff]  ;;  %v60_v56 = vld [vmem:[#allocation2 + $0x8] sm:$0xff]  ;;  %v62_v58 = vld [vmem:[#allocation2 + $0x18] sm:$0xff] }
  0x34   :  { %130 = vmatprep.subr.mxu0 %v68_v21  ;;  %238 = vmatprep.subr.mxu1 %v2467_v22  ;;  %v59_v33 = vld [vmem:[#allocation2] sm:$0xff] }
  0x35   :  { %131 = vmatpush1.msra.mxu0 %v67_v23  ;;  %239 = vmatpush1.msra.mxu1 %v2470_v24  ;;  %v79_v37 = vld [vmem:[%s3006_s3] sm:$0x3]  ;;  %s2402_s3 = smov [#allocation8]  }
  0x36   :  { %132 = vmatprep.subr.mxu0 %v66_v25  ;;  %240 = vmatprep.subr.mxu1 %v2473_v26  ;;  %v2531_v38 = vrot.slane %v79_v37, %v87_v36  ;;  %v2539_v47 = vrot.slane %v79_v37, %v83_v46  ;;  %s2122_s8 = sshll.u32 %s2402_s3, 4  ;;  %s2123_s8 = int_to_ptr.vmem [resolvable:$true] %s2122_s8 }
  0x37   :  { %133 = vmatpush1.msra.mxu0 %v65_v27  ;;  %241 = vmatpush1.msra.mxu1 %v2476_v28  ;;  %s2366_s9 = scalar_lea.vmem %s2123_s8, 256  ;;  %p2371_p2 = scmp.lt.s32.totalorder %s2123_s8, %s2123_s8 }
  0x38   :  { %134 = vmatprep.subr.mxu0 %v64_v29  ;;  %242 = vmatprep.subr.mxu1 %v2479_v30  ;;  %p2367_p1 = scmp.ne.s32.totalorder %s2123_s8, %s2366_s9  ;;  %p2372_p3 = scmp.lt.s32.totalorder %s2366_s9, %s2366_s9 }
  0x39   :  { %135 = vmatpush1.msra.mxu0 %v63_v31  ;;  %243 = vmatpush1.msra.mxu1 %v2482_v32 }
  0x3a   :  { %2132 = vmatmul.mubr.msk.f32.vlgmr.msra.gmra.mxu0 %vm91_vm0, %v59_v33  ;;  %277 = vmatmul.mubr.f32.vlgmr.msra.gmra.mxu1 %v2399_v0  ;;  %p2373_p4 = por %p2372_p3, %p2371_p2 }
  0x3b   :  { %332 = vmatprep.subr.mxu0 %v2439_v2  ;;  %174 = vmatprep.mubr.f32.mxu0 %v2399_v0 }
  0x3c   :  { %333 = vmatpush1.msra.mxu0 %v2442_v4  ;;  %457 = vmatprep.subr.mxu1 %v2439_v2  ;;  %p2374_p5 = pnand %p2373_p4, %p2367_p1 }
  0x3d   :  { %334 = vmatprep.subr.mxu0 %v2444_v6  ;;  %458 = vmatpush1.msra.mxu1 %v2442_v4 }
  0x3e   :  { %335 = vmatpush1.msra.mxu0 %v2447_v8  ;;  %459 = vmatprep.subr.mxu1 %v2444_v6 }
  0x3f   :  { %336 = vmatprep.subr.mxu0 %v2450_v10  ;;  %460 = vmatpush1.msra.mxu1 %v2447_v8 }
  0x40   :  { %337 = vmatpush1.msra.mxu0 %v2452_v12  ;;  %461 = vmatprep.subr.mxu1 %v2450_v10 }
  0x41   :  { %338 = vmatprep.subr.mxu0 %v2455_v14  ;;  %462 = vmatpush1.msra.mxu1 %v2452_v12 }
  0x42   :  { %339 = vmatpush1.msra.mxu0 %v2458_v16  ;;  %463 = vmatprep.subr.mxu1 %v2455_v14 }
  0x43   :  { %340 = vmatprep.subr.mxu0 %v2461_v18  ;;  %464 = vmatpush1.msra.mxu1 %v2458_v16 }
  0x44   :  { %341 = vmatpush1.msra.mxu0 %v2464_v20  ;;  %465 = vmatprep.subr.mxu1 %v2461_v18 }
  0x45   :  { %342 = vmatprep.subr.mxu0 %v2467_v22  ;;  %466 = vmatpush1.msra.mxu1 %v2464_v20 }
  0x46   :  { %343 = vmatpush1.msra.mxu0 %v2470_v24  ;;  %467 = vmatprep.subr.mxu1 %v2467_v22 }
  0x47   :  { %344 = vmatprep.subr.mxu0 %v2473_v26  ;;  %468 = vmatpush1.msra.mxu1 %v2470_v24 }
  0x48   :  { %345 = vmatpush1.msra.mxu0 %v2476_v28  ;;  %469 = vmatprep.subr.mxu1 %v2473_v26 }
  0x49   :  { %346 = vmatprep.subr.mxu0 %v2479_v30  ;;  %470 = vmatpush1.msra.mxu1 %v2476_v28 }
  0x4a   :  { %347 = vmatpush1.msra.mxu0 %v2482_v32  ;;  %471 = vmatprep.subr.mxu1 %v2479_v30 }
  0x4b   :  { %472 = vmatpush1.msra.mxu1 %v2482_v32  ;;  %505 = vmatprep.mubr.f32.mxu1 %v2399_v0 }
  0x4c   :  { %579 = vmatprep.subr.mxu0 %v2439_v2  ;;  %704 = vmatprep.subr.mxu1 %v2439_v2 }
  0x4d   :  { %2133 = vmatmul.mubr.msk.f32.gmra.mxu0 %vm91_vm0, %v60_v56 }
  0x4e   :  { %180 = vmatprep.mubr.f32.mxu0 %v2399_v0 }
  0x51   :  { %2134 = vmatmul.mubr.msk.f32.gmra.mxu0 %vm91_vm0, %v61_v57 }
  0x52   :  { %186 = vmatprep.mubr.f32.mxu0 %v2399_v0 }
  0x55   :  { %2135 = vmatmul.mubr.msk.f32.gmra.mxu0 %vm91_vm0, %v62_v58 }
  0x56   :  { %380 = vmatprep.mubr.f32.mxu0 %v2399_v0 }
  0xfa   :  { %v170_v39 = vpop.f32.mrf.mxu0  ;;  %v278_v40 = vpop.f32.mrf.mxu1 }
  0xfb   :  { %v2542_v48 = vadd.f32 %v170_v39, %v2539_v47 }
  0xfc   :  { %v172_v41 = vpop.f32.mrf.mxu0  ;;  %v280_v43 = vpop.f32.mrf.mxu1 }
  0xfd   :  { %v2534_v42 = vadd.f32 %v172_v41, %v2531_v38  ;;  %v283_v49 = vadd.f32 %v278_v40, %v2542_v48 }
  0xff   :  { %v284_v44 = vadd.f32 %v280_v43, %v2534_v42  ;;  %v285_v50 = vmul.f32 0.5, %v283_v49 }
 0x101   :  { %2162 = vtanh.f32 %v284_v44  ;;  %v286_v63 = vmul.f32 0.5, %v284_v44 }
 0x102   :  { %2164 = vtanh.f32 %v285_v50 }
 0x10d   :  { %v2572_v11 = vpop.f32.mrf.mxu0 }
 0x10e   :  { %v2163_v45 = vpop.eup %2162 }
 0x10f   :  { %296 = vrot.lane.b32.xlu0 %v2163_v45, %s2400_s7  ;;  %v2165_v51 = vpop.eup %2164  ;;  %v2574_v13 = vpop.f32.mrf.mxu0 }
 0x110   :  { %v289_v52 = vadd.f32 1.0, %v2165_v51 }
 0x111   :  { %v2576_v15 = vpop.f32.mrf.mxu0 }
 0x112   :  { %v291_v53 = vmul.f32 0.5, %v289_v52 }
 0x113   :  { %v2578_v17 = vpop.f32.mrf.mxu0 }
 0x114   :  { %v294_v59 = vmul.f32 0.0, %v291_v53 }
 0x115   :  { %v2580_v19 = vpop.f32.mrf.mxu0 }
 0x117   :  { %v2582_v21 = vpop.f32.mrf.mxu0 }
 0x181   :  { %v297_v54 = vpop.permute.xlu0 %296 }
 0x182   :  { %v299_v55 = vmul.f32 %v297_v54, %v291_v53 }
 0x184   :  { %301 = vrot.lane.b32.xlu0 %v299_v55, %s2400_s7 }
 0x1f6   :  { %v302_v60 = vpop.permute.xlu0 %301 }
 0x1f7   :  { %v304_v61 = vadd.f32 %v302_v60, %v294_v59 }
 0x1f9   :  { %2166 = vtanh.f32 %v304_v61  ;;  %v405_v44 = vrot.slane %v304_v61, 6 }
 0x1fa   :  { %2168 = vtanh.f32 %v286_v63 }
 0x206   :  { %v2167_v62 = vpop.eup %2166 }
 0x207   :  { %307 = vrot.lane.b32.xlu1 %v2167_v62, %s2400_s7  ;;  %v2169_v1 = vpop.eup %2168 }
 0x208   :  { %v290_v3 = vadd.f32 1.0, %v2169_v1 }
 0x20a   :  { %v292_v5 = vmul.f32 0.5, %v290_v3 }
 0x279   :  { %v308_v7 = vpop.permute.xlu1 %307 }
 0x27a   :  { %v310_v9 = vmul.f32 %v308_v7, %v292_v5 }
 0x27c   :  { %312 = vst.msk [vmem:[#allocation8] sm:$0x3] %vm311_vm1, %v310_v9  ;;  %2136 = vmatmul.mubr.msk.f32.vlgmr.msra.gmra.mxu0 %vm91_vm0, %v310_v9 }
 0x27d   :  { %580 = vmatpush1.msra.mxu0 %v2442_v4  ;;  %627 = vmatprep.mubr.f32.mxu0 %v2399_v0 }
 0x27e   :  { %581 = vmatprep.subr.mxu0 %v2444_v6 }
 0x27f   :  { %582 = vmatpush1.msra.mxu0 %v2447_v8 }
 0x280   :  { %583 = vmatprep.subr.mxu0 %v2450_v10 }
 0x281   :  { %584 = vmatpush1.msra.mxu0 %v2452_v12 }
 0x282   :  { %585 = vmatprep.subr.mxu0 %v2455_v14 }
 0x283   :  { %586 = vmatpush1.msra.mxu0 %v2458_v16 }
 0x284   :  { %587 = vmatprep.subr.mxu0 %v2461_v18 }
 0x285   :  { %588 = vmatpush1.msra.mxu0 %v2464_v20 }
 0x286   :  { %589 = vmatprep.subr.mxu0 %v2467_v22 }
 0x287   :  { %590 = vmatpush1.msra.mxu0 %v2470_v24 }
 0x288   :  { %591 = vmatprep.subr.mxu0 %v2473_v26 }
 0x289   :  { %592 = vmatpush1.msra.mxu0 %v2476_v28 }
 0x28a   :  { %593 = vmatprep.subr.mxu0 %v2479_v30 }
 0x28b   :  { %594 = vmatpush1.msra.mxu0 %v2482_v32 }
 0x28c   :  { %810 = vmatprep.subr.mxu0 %v2439_v2 }
 0x33c   :  { %v382_v23 = vpop.f32.mrf.mxu0 }
 0x33d   :  { %v389_v33 = vrot.slane %v382_v23, 6 }
 0x33e   :  { %v384_v25 = vpop.f32.mrf.mxu0 }
 0x33f   :  { %v390_v27 = vrot.slane %v384_v25, 6  ;;  %v393_v34 = vadd.f32 %v389_v33, %v2542_v48 }
 0x341   :  { %v394_v29 = vadd.f32 %v390_v27, %v2534_v42  ;;  %v395_v36 = vmul.f32 0.5, %v393_v34 }
 0x343   :  { %2170 = vtanh.f32 %v394_v29  ;;  %v396_v51 = vmul.f32 0.5, %v394_v29 }
 0x344   :  { %2172 = vtanh.f32 %v395_v36 }
 0x350   :  { %v2171_v31 = vpop.eup %2170 }
 0x351   :  { %409 = vrot.lane.b32.xlu1 %v2171_v31, %s2400_s7  ;;  %v2173_v37 = vpop.eup %2172 }
 0x352   :  { %v399_v39 = vadd.f32 1.0, %v2173_v37 }
 0x354   :  { %v401_v40 = vmul.f32 0.5, %v399_v39  ;;  %v2401_v39 = vmov 1983009808  }
 0x356   :  { %v407_v45 = vmul.f32 %v405_v44, %v401_v40 }
 0x3c3   :  { %v410_v41 = vpop.permute.xlu1 %409 }
 0x3c4   :  { %v412_v43 = vmul.f32 %v410_v41, %v401_v40  ;;  %v426_v40 = vunpack.c.l.s4 %v2401_v39 }
 0x3c6   :  { %414 = vrot.lane.b32.xlu0 %v412_v43, %s2400_s7  ;;  %v427_v43 = vunpack.c.0.s8 %v426_v40 }
 0x438   :  { %v415_v46 = vpop.permute.xlu0 %414 }
 0x439   :  { %v417_v49 = vadd.f32 %v415_v46, %v407_v45 }
 0x43b   :  { %2174 = vtanh.f32 %v417_v49  ;;  %v530_v27 = vrot.slane %v417_v49, 6 }
 0x43c   :  { %2176 = vtanh.f32 %v396_v51 }
 0x448   :  { %v2175_v50 = vpop.eup %2174 }
 0x449   :  { %420 = vrot.lane.b32.xlu1 %v2175_v50, %s2400_s7  ;;  %v2177_v52 = vpop.eup %2176  ;;  %v2616_v50 = vsub.s32 %v427_v43, %v2525_v35  ;;  %v2672_v43 = vadd.f32 %v2572_v11, %v2539_v47 }
 0x44a   :  { %v400_v53 = vadd.f32 1.0, %v2177_v52 }
 0x44c   :  { %v402_v54 = vmul.f32 0.5, %v400_v53 }
 0x4bb   :  { %v421_v55 = vpop.permute.xlu1 %420 }
 0x4bc   :  { %v2589_v56 = vmul.f32 %v421_v55, %v402_v54 }
 0x4be   :  { %v438_v57 = vrot.slane %v2589_v56, 2 }
 0x4c0   :  { %2137 = vmatmul.mubr.msk.f32.vlgmr.msra.gmra.mxu1 %vm91_vm0, %v438_v57 }
 0x4c1   :  { %705 = vmatpush1.msra.mxu1 %v2442_v4  ;;  %752 = vmatprep.mubr.f32.mxu1 %v2399_v0 }
 0x4c2   :  { %706 = vmatprep.subr.mxu1 %v2444_v6 }
 0x4c3   :  { %707 = vmatpush1.msra.mxu1 %v2447_v8 }
 0x4c4   :  { %708 = vmatprep.subr.mxu1 %v2450_v10 }
 0x4c5   :  { %709 = vmatpush1.msra.mxu1 %v2452_v12 }
 0x4c6   :  { %710 = vmatprep.subr.mxu1 %v2455_v14 }
 0x4c7   :  { %711 = vmatpush1.msra.mxu1 %v2458_v16 }
 0x4c8   :  { %712 = vmatprep.subr.mxu1 %v2461_v18 }
 0x4c9   :  { %713 = vmatpush1.msra.mxu1 %v2464_v20 }
 0x4ca   :  { %714 = vmatprep.subr.mxu1 %v2467_v22 }
 0x4cb   :  { %715 = vmatpush1.msra.mxu1 %v2470_v24 }
 0x4cc   :  { %716 = vmatprep.subr.mxu1 %v2473_v26 }
 0x4cd   :  { %717 = vmatpush1.msra.mxu1 %v2476_v28 }
 0x4ce   :  { %718 = vmatprep.subr.mxu1 %v2479_v30 }
 0x4cf   :  { %719 = vmatpush1.msra.mxu1 %v2482_v32 }
 0x4d0   :  { %934 = vmatprep.subr.mxu1 %v2439_v2 }
 0x580   :  { %v507_v58 = vpop.f32.mrf.mxu1 }
 0x581   :  { %v514_v63 = vrot.slane %v507_v58, 4 }
 0x582   :  { %v509_v59 = vpop.f32.mrf.mxu1 }
 0x583   :  { %v515_v60 = vrot.slane %v509_v59, 4  ;;  %v518_v1 = vadd.f32 %v514_v63, %v2542_v48 }
 0x585   :  { %v519_v61 = vadd.f32 %v515_v60, %v2534_v42  ;;  %v520_v3 = vmul.f32 0.5, %v518_v1 }
 0x587   :  { %2178 = vtanh.f32 %v519_v61  ;;  %v521_v36 = vmul.f32 0.5, %v519_v61 }
 0x588   :  { %2180 = vtanh.f32 %v520_v3 }
 0x594   :  { %v2179_v62 = vpop.eup %2178 }
 0x595   :  { %534 = vrot.lane.b32.xlu0 %v2179_v62, %s2400_s7  ;;  %v2181_v5 = vpop.eup %2180 }
 0x596   :  { %v524_v7 = vadd.f32 1.0, %v2181_v5 }
 0x598   :  { %v526_v9 = vmul.f32 0.5, %v524_v7 }
 0x59a   :  { %v532_v29 = vmul.f32 %v530_v27, %v526_v9 }
 0x607   :  { %v535_v23 = vpop.permute.xlu0 %534 }
 0x608   :  { %v537_v25 = vmul.f32 %v535_v23, %v526_v9 }
 0x60a   :  { %539 = vrot.lane.b32.xlu1 %v537_v25, %s2400_s7 }
 0x67c   :  { %v540_v31 = vpop.permute.xlu1 %539 }
 0x67d   :  { %v542_v33 = vadd.f32 %v540_v31, %v532_v29 }
 0x67f   :  { %2182 = vtanh.f32 %v542_v33  ;;  %v652_v5 = vrot.slane %v542_v33, 6 }
 0x680   :  { %2184 = vtanh.f32 %v521_v36 }
 0x68c   :  { %v2183_v34 = vpop.eup %2182 }
 0x68d   :  { %545 = vrot.lane.b32.xlu0 %v2183_v34, %s2400_s7  ;;  %v2185_v37 = vpop.eup %2184 }
 0x68e   :  { %v525_v41 = vadd.f32 1.0, %v2185_v37  ;;  %v2666_v37 = vadd.f32 %v2574_v13, %v2531_v38 }
 0x690   :  { %v527_v44 = vmul.f32 0.5, %v525_v41 }
 0x6ff   :  { %v546_v45 = vpop.permute.xlu0 %545 }
 0x700   :  { %v548_v46 = vmul.f32 %v546_v45, %v527_v44 }
 0x702   :  { %v550_v49 = vcombine.high %v548_v46, %v548_v46  ;;  %v560_v51 = vrot.slane %v548_v46, 4 }
 0x704   :  { %v557_v52 = vrot.slane %v550_v49, %v2616_v50  ;;  %2138 = vmatmul.mubr.msk.f32.vlgmr.msra.gmra.mxu0 %vm91_vm0, %v560_v51 }
 0x705   :  { %811 = vmatpush1.msra.mxu0 %v2442_v4  ;;  %858 = vmatprep.mubr.f32.mxu0 %v2399_v0 }
 0x706   :  { %559 = vst.msk [vmem:[#allocation8 + $0x2] sm:$0x3] %vm311_vm1, %v557_v52  ;;  %812 = vmatprep.subr.mxu0 %v2444_v6 }
 0x707   :  { %813 = vmatpush1.msra.mxu0 %v2447_v8 }
 0x708   :  { %814 = vmatprep.subr.mxu0 %v2450_v10 }
 0x709   :  { %815 = vmatpush1.msra.mxu0 %v2452_v12 }
 0x70a   :  { %816 = vmatprep.subr.mxu0 %v2455_v14 }
 0x70b   :  { %817 = vmatpush1.msra.mxu0 %v2458_v16 }
 0x70c   :  { %818 = vmatprep.subr.mxu0 %v2461_v18 }
 0x70d   :  { %819 = vmatpush1.msra.mxu0 %v2464_v20 }
 0x70e   :  { %820 = vmatprep.subr.mxu0 %v2467_v22 }
 0x70f   :  { %821 = vmatpush1.msra.mxu0 %v2470_v24 }
 0x710   :  { %822 = vmatprep.subr.mxu0 %v2473_v26 }
 0x711   :  { %823 = vmatpush1.msra.mxu0 %v2476_v28 }
 0x712   :  { %824 = vmatprep.subr.mxu0 %v2479_v30 }
 0x713   :  { %825 = vmatpush1.msra.mxu0 %v2482_v32 }
 0x714   :  { %1056 = vmatprep.subr.mxu0 %v2439_v2 }
 0x7c4   :  { %v629_v35 = vpop.f32.mrf.mxu0 }
 0x7c5   :  { %v636_v58 = vrot.slane %v629_v35, 2 }
 0x7c6   :  { %v631_v53 = vpop.f32.mrf.mxu0 }
 0x7c7   :  { %v637_v54 = vrot.slane %v631_v53, 2  ;;  %v640_v59 = vadd.f32 %v636_v58, %v2542_v48 }
 0x7c9   :  { %v641_v55 = vadd.f32 %v637_v54, %v2534_v42  ;;  %v642_v60 = vmul.f32 0.5, %v640_v59 }
 0x7cb   :  { %2186 = vtanh.f32 %v641_v55  ;;  %v643_v25 = vmul.f32 0.5, %v641_v55 }
 0x7cc   :  { %2188 = vtanh.f32 %v642_v60 }
 0x7d8   :  { %v2187_v57 = vpop.eup %2186 }
 0x7d9   :  { %656 = vrot.lane.b32.xlu1 %v2187_v57, %s2400_s7  ;;  %v2189_v61 = vpop.eup %2188 }
 0x7da   :  { %v646_v62 = vadd.f32 1.0, %v2189_v61 }
 0x7dc   :  { %v648_v63 = vmul.f32 0.5, %v646_v62 }
 0x7de   :  { %v654_v7 = vmul.f32 %v652_v5, %v648_v63 }
 0x84b   :  { %v657_v1 = vpop.permute.xlu1 %656 }
 0x84c   :  { %v659_v3 = vmul.f32 %v657_v1, %v648_v63 }
 0x84e   :  { %661 = vrot.lane.b32.xlu0 %v659_v3, %s2400_s7 }
 0x8c0   :  { %v662_v9 = vpop.permute.xlu0 %661 }
 0x8c1   :  { %v664_v42 = vadd.f32 %v662_v9, %v654_v7 }
 0x8c3   :  { %2190 = vtanh.f32 %v664_v42  ;;  %v771_v35 = vrot.slane %v664_v42, 6 }
 0x8c4   :  { %2192 = vtanh.f32 %v643_v25 }
 0x8d0   :  { %v2191_v23 = vpop.eup %2190 }
 0x8d1   :  { %667 = vrot.lane.b32.xlu1 %v2191_v23, %s2400_s7  ;;  %v2193_v48 = vpop.eup %2192 }
 0x8d2   :  { %v647_v27 = vadd.f32 1.0, %v2193_v48 }
 0x8d4   :  { %v649_v29 = vmul.f32 0.5, %v647_v27 }
 0x943   :  { %v668_v31 = vpop.permute.xlu1 %667 }
 0x944   :  { %v2643_v34 = vmul.f32 %v668_v31, %v649_v29 }
 0x946   :  { %v685_v36 = vrot.slane %v2643_v34, 6 }
 0x948   :  { %2139 = vmatmul.mubr.msk.f32.vlgmr.msra.gmra.mxu1 %vm91_vm0, %v685_v36 }
 0x949   :  { %935 = vmatpush1.msra.mxu1 %v2442_v4  ;;  %982 = vmatprep.mubr.f32.mxu1 %v2399_v0 }
 0x94a   :  { %936 = vmatprep.subr.mxu1 %v2444_v6 }
 0x94b   :  { %937 = vmatpush1.msra.mxu1 %v2447_v8 }
 0x94c   :  { %938 = vmatprep.subr.mxu1 %v2450_v10 }
 0x94d   :  { %939 = vmatpush1.msra.mxu1 %v2452_v12 }
 0x94e   :  { %940 = vmatprep.subr.mxu1 %v2455_v14 }
 0x94f   :  { %941 = vmatpush1.msra.mxu1 %v2458_v16 }
 0x950   :  { %942 = vmatprep.subr.mxu1 %v2461_v18 }
 0x951   :  { %943 = vmatpush1.msra.mxu1 %v2464_v20 }
 0x952   :  { %944 = vmatprep.subr.mxu1 %v2467_v22 }
 0x953   :  { %945 = vmatpush1.msra.mxu1 %v2470_v24 }
 0x954   :  { %946 = vmatprep.subr.mxu1 %v2473_v26 }
 0x955   :  { %947 = vmatpush1.msra.mxu1 %v2476_v28 }
 0x956   :  { %948 = vmatprep.subr.mxu1 %v2479_v30 }
 0x957   :  { %949 = vmatpush1.msra.mxu1 %v2482_v32 }
 0x958   :  { %1181 = vmatprep.subr.mxu1 %v2439_v2 }
 0xa08   :  { %v754_v33 = vpop.f32.mrf.mxu1 }
 0xa09   :  { %v759_v44 = vadd.f32 %v754_v33, %v2672_v43 }
 0xa0a   :  { %v756_v39 = vpop.f32.mrf.mxu1 }
 0xa0b   :  { %v760_v40 = vadd.f32 %v756_v39, %v2666_v37  ;;  %v761_v45 = vmul.f32 0.5, %v759_v44 }
 0xa0d   :  { %2194 = vtanh.f32 %v760_v40  ;;  %v762_v11 = vmul.f32 0.5, %v760_v40 }
 0xa0e   :  { %2196 = vtanh.f32 %v761_v45 }
 0xa1a   :  { %v2195_v41 = vpop.eup %2194 }
 0xa1b   :  { %775 = vrot.lane.b32.xlu0 %v2195_v41, %s2400_s7  ;;  %v2197_v46 = vpop.eup %2196 }
 0xa1c   :  { %v765_v49 = vadd.f32 1.0, %v2197_v46 }
 0xa1e   :  { %v767_v51 = vmul.f32 0.5, %v765_v49 }
 0xa20   :  { %v773_v53 = vmul.f32 %v771_v35, %v767_v51 }
 0xa8d   :  { %v776_v13 = vpop.permute.xlu0 %775 }
 0xa8e   :  { %v778_v52 = vmul.f32 %v776_v13, %v767_v51 }
 0xa90   :  { %780 = vrot.lane.b32.xlu1 %v778_v52, %s2400_s7 }
 0xb02   :  { %v781_v54 = vpop.permute.xlu1 %780 }
 0xb03   :  { %v783_v55 = vadd.f32 %v781_v54, %v773_v53 }
 0xb05   :  { %2198 = vtanh.f32 %v783_v55  ;;  %v883_v36 = vrot.slane %v783_v55, 6 }
 0xb06   :  { %2200 = vtanh.f32 %v762_v11 }
 0xb12   :  { %v2199_v57 = vpop.eup %2198 }
 0xb13   :  { %786 = vrot.lane.b32.xlu0 %v2199_v57, %s2400_s7  ;;  %v2201_v58 = vpop.eup %2200 }
 0xb14   :  { %v766_v59 = vadd.f32 1.0, %v2201_v58 }
 0xb16   :  { %v768_v60 = vmul.f32 0.5, %v766_v59 }
 0xb85   :  { %v787_v61 = vpop.permute.xlu0 %786 }
 0xb86   :  { %v789_v62 = vmul.f32 %v787_v61, %v768_v60 }
 0xb88   :  { %790 = vst.msk [vmem:[#allocation8 + $0x4] sm:$0x3] %vm311_vm1, %v789_v62  ;;  %2140 = vmatmul.mubr.msk.f32.vlgmr.msra.gmra.mxu0 %vm91_vm0, %v789_v62 }
 0xb89   :  { %1057 = vmatpush1.msra.mxu0 %v2442_v4  ;;  %1104 = vmatprep.mubr.f32.mxu0 %v2399_v0 }
 0xb8a   :  { %1058 = vmatprep.subr.mxu0 %v2444_v6 }
 0xb8b   :  { %1059 = vmatpush1.msra.mxu0 %v2447_v8 }
 0xb8c   :  { %1060 = vmatprep.subr.mxu0 %v2450_v10 }
 0xb8d   :  { %1061 = vmatpush1.msra.mxu0 %v2452_v12 }
 0xb8e   :  { %1062 = vmatprep.subr.mxu0 %v2455_v14 }
 0xb8f   :  { %1063 = vmatpush1.msra.mxu0 %v2458_v16 }
 0xb90   :  { %1064 = vmatprep.subr.mxu0 %v2461_v18 }
 0xb91   :  { %1065 = vmatpush1.msra.mxu0 %v2464_v20 }
 0xb92   :  { %1066 = vmatprep.subr.mxu0 %v2467_v22 }
 0xb93   :  { %1067 = vmatpush1.msra.mxu0 %v2470_v24 }
 0xb94   :  { %1068 = vmatprep.subr.mxu0 %v2473_v26 }
 0xb95   :  { %1069 = vmatpush1.msra.mxu0 %v2476_v28 }
 0xb96   :  { %1070 = vmatprep.subr.mxu0 %v2479_v30 }
 0xb97   :  { %1071 = vmatpush1.msra.mxu0 %v2482_v32 }
 0xb98   :  { %1287 = vmatprep.subr.mxu0 %v2439_v2 }
 0xc48   :  { %v860_v63 = vpop.f32.mrf.mxu0 }
 0xc49   :  { %v867_v9 = vrot.slane %v860_v63, 6 }
 0xc4a   :  { %v862_v1 = vpop.f32.mrf.mxu0 }
 0xc4b   :  { %v868_v3 = vrot.slane %v862_v1, 6  ;;  %v871_v42 = vadd.f32 %v867_v9, %v2672_v43 }
 0xc4d   :  { %v872_v5 = vadd.f32 %v868_v3, %v2666_v37  ;;  %v873_v23 = vmul.f32 0.5, %v871_v42 }
 0xc4f   :  { %2202 = vtanh.f32 %v872_v5  ;;  %v874_v44 = vmul.f32 0.5, %v872_v5 }
 0xc50   :  { %2204 = vtanh.f32 %v873_v23 }
 0xc5c   :  { %v2203_v7 = vpop.eup %2202 }
 0xc5d   :  { %887 = vrot.lane.b32.xlu1 %v2203_v7, %s2400_s7  ;;  %v2205_v25 = vpop.eup %2204 }
 0xc5e   :  { %v877_v48 = vadd.f32 1.0, %v2205_v25 }
 0xc60   :  { %v879_v27 = vmul.f32 0.5, %v877_v48 }
 0xc62   :  { %v885_v33 = vmul.f32 %v883_v36, %v879_v27 }
 0xccf   :  { %v888_v29 = vpop.permute.xlu1 %887 }
 0xcd0   :  { %v890_v31 = vmul.f32 %v888_v29, %v879_v27 }
 0xcd2   :  { %892 = vrot.lane.b32.xlu0 %v890_v31, %s2400_s7 }
 0xd44   :  { %v893_v39 = vpop.permute.xlu0 %892 }
 0xd45   :  { %v895_v40 = vadd.f32 %v893_v39, %v885_v33 }
 0xd47   :  { %2206 = vtanh.f32 %v895_v40  ;;  %v1007_v3 = vrot.slane %v895_v40, 6 }
 0xd48   :  { %2208 = vtanh.f32 %v874_v44 }
 0xd54   :  { %v2207_v41 = vpop.eup %2206 }
 0xd55   :  { %898 = vrot.lane.b32.xlu1 %v2207_v41, %s2400_s7  ;;  %v2209_v45 = vpop.eup %2208 }
 0xd56   :  { %v878_v46 = vadd.f32 1.0, %v2209_v45 }
 0xd58   :  { %v880_v49 = vmul.f32 0.5, %v878_v46 }
 0xdc7   :  { %v899_v51 = vpop.permute.xlu1 %898 }
 0xdc8   :  { %v2701_v13 = vmul.f32 %v899_v51, %v880_v49 }
 0xdca   :  { %v915_v52 = vrot.slane %v2701_v13, 2 }
 0xdcc   :  { %2141 = vmatmul.mubr.msk.f32.vlgmr.msra.gmra.mxu1 %vm91_vm0, %v915_v52 }
 0xdcd   :  { %1182 = vmatpush1.msra.mxu1 %v2442_v4  ;;  %1229 = vmatprep.mubr.f32.mxu1 %v2399_v0 }
 0xdce   :  { %1183 = vmatprep.subr.mxu1 %v2444_v6 }
 0xdcf   :  { %1184 = vmatpush1.msra.mxu1 %v2447_v8 }
 0xdd0   :  { %1185 = vmatprep.subr.mxu1 %v2450_v10 }
 0xdd1   :  { %1186 = vmatpush1.msra.mxu1 %v2452_v12 }
 0xdd2   :  { %1187 = vmatprep.subr.mxu1 %v2455_v14 }
 0xdd3   :  { %1188 = vmatpush1.msra.mxu1 %v2458_v16 }
 0xdd4   :  { %1189 = vmatprep.subr.mxu1 %v2461_v18 }
 0xdd5   :  { %1190 = vmatpush1.msra.mxu1 %v2464_v20 }
 0xdd6   :  { %1191 = vmatprep.subr.mxu1 %v2467_v22 }
 0xdd7   :  { %1192 = vmatpush1.msra.mxu1 %v2470_v24 }
 0xdd8   :  { %1193 = vmatprep.subr.mxu1 %v2473_v26 }
 0xdd9   :  { %1194 = vmatpush1.msra.mxu1 %v2476_v28 }
 0xdda   :  { %1195 = vmatprep.subr.mxu1 %v2479_v30 }
 0xddb   :  { %1196 = vmatpush1.msra.mxu1 %v2482_v32 }
 0xddc   :  { %1411 = vmatprep.subr.mxu1 %v2439_v2 }
 0xe8c   :  { %v984_v35 = vpop.f32.mrf.mxu1 }
 0xe8d   :  { %v991_v11 = vrot.slane %v984_v35, 4 }
 0xe8e   :  { %v986_v53 = vpop.f32.mrf.mxu1 }
 0xe8f   :  { %v992_v54 = vrot.slane %v986_v53, 4  ;;  %v995_v58 = vadd.f32 %v991_v11, %v2672_v43 }
 0xe91   :  { %v996_v55 = vadd.f32 %v992_v54, %v2666_v37  ;;  %v997_v59 = vmul.f32 0.5, %v995_v58 }
 0xe93   :  { %2210 = vtanh.f32 %v996_v55  ;;  %v998_v23 = vmul.f32 0.5, %v996_v55 }
 0xe94   :  { %2212 = vtanh.f32 %v997_v59 }
 0xea0   :  { %v2211_v57 = vpop.eup %2210 }
 0xea1   :  { %1011 = vrot.lane.b32.xlu0 %v2211_v57, %s2400_s7  ;;  %v2213_v60 = vpop.eup %2212 }
 0xea2   :  { %v1001_v61 = vadd.f32 1.0, %v2213_v60 }
 0xea4   :  { %v1003_v62 = vmul.f32 0.5, %v1001_v61 }
 0xea6   :  { %v1009_v5 = vmul.f32 %v1007_v3, %v1003_v62  ;;  %v2763_v3 = vld [vmem:[#allocation7 + $0x60] sm:$0xff] }
 0xf13   :  { %v1012_v63 = vpop.permute.xlu0 %1011 }
 0xf14   :  { %v1014_v1 = vmul.f32 %v1012_v63, %v1003_v62  ;;  %v2756_v63 = vld [vmem:[#allocation7 + $0x70] sm:$0xff] }
 0xf16   :  { %1016 = vrot.lane.b32.xlu1 %v1014_v1, %s2400_s7  ;;  %v2760_v1 = vld [vmem:[#allocation7 + $0x68] sm:$0xff] }
 0xf88   :  { %v1017_v7 = vpop.permute.xlu1 %1016 }
 0xf89   :  { %v1019_v9 = vadd.f32 %v1017_v7, %v1009_v5 }
 0xf8b   :  { %2214 = vtanh.f32 %v1019_v9 }
 0xf8c   :  { %2216 = vtanh.f32 %v998_v23 }
 0xf98   :  { %v2215_v42 = vpop.eup %2214 }
 0xf99   :  { %1022 = vrot.lane.b32.xlu0 %v2215_v42, %s2400_s7  ;;  %v2217_v25 = vpop.eup %2216 }
 0xf9a   :  { %v1002_v48 = vadd.f32 1.0, %v2217_v25 }
 0xf9c   :  { %v1004_v27 = vmul.f32 0.5, %v1002_v48 }
0x100b   :  { %v1023_v29 = vpop.permute.xlu0 %1022 }
0x100c   :  { %v1025_v31 = vmul.f32 %v1023_v29, %v1004_v27 }
0x100e   :  { %v1027_v36 = vcombine.high %v1025_v31, %v1025_v31  ;;  %v1037_v33 = vrot.slane %v1025_v31, 4 }
0x1010   :  { %v1034_v39 = vrot.slane %v1027_v36, %v2616_v50  ;;  %2142 = vmatmul.mubr.msk.f32.vlgmr.msra.gmra.mxu0 %vm91_vm0, %v1037_v33  ;;  %v2800_v33 = vld [vmem:[#allocation7 + $0x58] sm:$0xff] }
0x1011   :  { %1288 = vmatpush1.msra.mxu0 %v2442_v4  ;;  %1335 = vmatprep.mubr.f32.mxu0 %v2399_v0 }
0x1012   :  { %1036 = vst.msk [vmem:[#allocation8 + $0x6] sm:$0x3] %vm311_vm1, %v1034_v39  ;;  %1289 = vmatprep.subr.mxu0 %v2444_v6  ;;  %v2803_v39 = vld [vmem:[#allocation7 + $0x50] sm:$0xff] }
0x1013   :  { %1290 = vmatpush1.msra.mxu0 %v2447_v8 }
0x1014   :  { %1291 = vmatprep.subr.mxu0 %v2450_v10 }
0x1015   :  { %1292 = vmatpush1.msra.mxu0 %v2452_v12 }
0x1016   :  { %1293 = vmatprep.subr.mxu0 %v2455_v14 }
0x1017   :  { %1294 = vmatpush1.msra.mxu0 %v2458_v16 }
0x1018   :  { %1295 = vmatprep.subr.mxu0 %v2461_v18 }
0x1019   :  { %1296 = vmatpush1.msra.mxu0 %v2464_v20 }
0x101a   :  { %1297 = vmatprep.subr.mxu0 %v2467_v22 }
0x101b   :  { %1298 = vmatpush1.msra.mxu0 %v2470_v24 }
0x101c   :  { %1299 = vmatprep.subr.mxu0 %v2473_v26 }
0x101d   :  { %1300 = vmatpush1.msra.mxu0 %v2476_v28 }
0x101e   :  { %1301 = vmatprep.subr.mxu0 %v2479_v30 }
0x101f   :  { %1302 = vmatpush1.msra.mxu0 %v2482_v32 }
0x1020   :  { %1533 = vmatprep.subr.mxu0 %v2439_v2  ;;  %v1129_v2 = vrot.slane %v1019_v9, 6 }
0x10d0   :  { %v1106_v4 = vpop.f32.mrf.mxu0 }
0x10d1   :  { %v1113_v44 = vrot.slane %v1106_v4, 2  ;;  %v2806_v4 = vld [vmem:[#allocation7 + $0x48] sm:$0xff] }
0x10d2   :  { %v1108_v6 = vpop.f32.mrf.mxu0 }
0x10d3   :  { %v1114_v8 = vrot.slane %v1108_v6, 2  ;;  %v1117_v45 = vadd.f32 %v1113_v44, %v2672_v43  ;;  %v2809_v6 = vld [vmem:[#allocation7 + $0x40] sm:$0xff] }
0x10d4   :  { %v2821_v44 = vld [vmem:[#allocation7 + $0x20] sm:$0xff] }
0x10d5   :  { %v1118_v40 = vadd.f32 %v1114_v8, %v2666_v37  ;;  %v1119_v46 = vmul.f32 0.5, %v1117_v45  ;;  %v2812_v8 = vld [vmem:[#allocation7 + $0x38] sm:$0xff] }
0x10d6   :  { %v2824_v45 = vld [vmem:[#allocation7 + $0x18] sm:$0xff] }
0x10d7   :  { %2218 = vtanh.f32 %v1118_v40  ;;  %v1120_v11 = vmul.f32 0.5, %v1118_v40  ;;  %v2815_v40 = vld [vmem:[#allocation7 + $0x30] sm:$0xff] }
0x10d8   :  { %2220 = vtanh.f32 %v1119_v46  ;;  %v2827_v46 = vld [vmem:[#allocation7 + $0x10] sm:$0xff] }
0x10e4   :  { %v2219_v41 = vpop.eup %2218 }
0x10e5   :  { %1133 = vrot.lane.b32.xlu1 %v2219_v41, %s2400_s7  ;;  %v2221_v49 = vpop.eup %2220  ;;  %v2818_v41 = vld [vmem:[#allocation7 + $0x28] sm:$0xff] }
0x10e6   :  { %v1123_v51 = vadd.f32 1.0, %v2221_v49  ;;  %v2830_v49 = vld [vmem:[#allocation7 + $0x8] sm:$0xff] }
0x10e8   :  { %v1125_v52 = vmul.f32 0.5, %v1123_v51  ;;  %v2833_v51 = vld [vmem:[#allocation7] sm:$0xff] }
0x10ea   :  { %v1131_v54 = vmul.f32 %v1129_v2, %v1125_v52 }
0x1157   :  { %v1134_v35 = vpop.permute.xlu1 %1133 }
0x1158   :  { %v1136_v53 = vmul.f32 %v1134_v35, %v1125_v52 }
0x115a   :  { %1138 = vrot.lane.b32.xlu0 %v1136_v53, %s2400_s7 }
0x11cc   :  { %v1139_v55 = vpop.permute.xlu0 %1138 }
0x11cd   :  { %v1141_v37 = vadd.f32 %v1139_v55, %v1131_v54 }
0x11cf   :  { %2222 = vtanh.f32 %v1141_v37  ;;  %v1248_v7 = vrot.slane %v1141_v37, 6 }
0x11d0   :  { %2224 = vtanh.f32 %v1120_v11 }
0x11dc   :  { %v2223_v57 = vpop.eup %2222 }
0x11dd   :  { %1144 = vrot.lane.b32.xlu1 %v2223_v57, %s2400_s7  ;;  %v2225_v43 = vpop.eup %2224 }
0x11de   :  { %v1124_v58 = vadd.f32 1.0, %v2225_v43 }
0x11e0   :  { %v1126_v59 = vmul.f32 0.5, %v1124_v58 }
0x124f   :  { %v1145_v60 = vpop.permute.xlu1 %1144 }
0x1250   :  { %v2752_v61 = vmul.f32 %v1145_v60, %v1126_v59 }
0x1252   :  { %v1162_v62 = vrot.slane %v2752_v61, 6 }
0x1254   :  { %2143 = vmatmul.mubr.msk.f32.vlgmr.msra.gmra.mxu1 %vm91_vm0, %v1162_v62 }
0x1255   :  { %1412 = vmatpush1.msra.mxu1 %v2756_v63  ;;  %1459 = vmatprep.mubr.f32.mxu1 %v2399_v0 }
0x1256   :  { %1413 = vmatprep.subr.mxu1 %v2760_v1 }
0x1257   :  { %1414 = vmatpush1.msra.mxu1 %v2763_v3 }
0x1258   :  { %1415 = vmatprep.subr.mxu1 %v2450_v10  ;;  %v2778_v10 = vld [vmem:[#allocation7 + $0x78] sm:$0xff] }
0x1259   :  { %1416 = vmatpush1.msra.mxu1 %v2452_v12 }
0x125a   :  { %1417 = vmatprep.subr.mxu1 %v2455_v14  ;;  %v2783_v14 = vadd.f32 %v2578_v17, %v2531_v38 }
0x125b   :  { %1418 = vmatpush1.msra.mxu1 %v2458_v16 }
0x125c   :  { %1419 = vmatprep.subr.mxu1 %v2461_v18 }
0x125d   :  { %1420 = vmatpush1.msra.mxu1 %v2464_v20 }
0x125e   :  { %1421 = vmatprep.subr.mxu1 %v2467_v22  ;;  %v2789_v22 = vadd.f32 %v2576_v15, %v2539_v47 }
0x125f   :  { %1422 = vmatpush1.msra.mxu1 %v2470_v24 }
0x1260   :  { %1423 = vmatprep.subr.mxu1 %v2473_v26 }
0x1261   :  { %1424 = vmatpush1.msra.mxu1 %v2476_v28 }
0x1262   :  { %1425 = vmatprep.subr.mxu1 %v2479_v30 }
0x1263   :  { %1426 = vmatpush1.msra.mxu1 %v2482_v32 }
0x1264   :  { %1658 = vmatprep.subr.mxu1 %v2778_v10 }
0x1314   :  { %v1231_v12 = vpop.f32.mrf.mxu1 }
0x1315   :  { %v1236_v24 = vadd.f32 %v1231_v12, %v2789_v22 }
0x1316   :  { %v1233_v16 = vpop.f32.mrf.mxu1 }
0x1317   :  { %v1237_v18 = vadd.f32 %v1233_v16, %v2783_v14  ;;  %v1238_v26 = vmul.f32 0.5, %v1236_v24 }
0x1319   :  { %2226 = vtanh.f32 %v1237_v18  ;;  %v1239_v15 = vmul.f32 0.5, %v1237_v18 }
0x131a   :  { %2228 = vtanh.f32 %v1238_v26 }
0x1326   :  { %v2227_v20 = vpop.eup %2226 }
0x1327   :  { %1252 = vrot.lane.b32.xlu0 %v2227_v20, %s2400_s7  ;;  %v2229_v28 = vpop.eup %2228 }
0x1328   :  { %v1242_v30 = vadd.f32 1.0, %v2229_v28 }
0x132a   :  { %v1244_v32 = vmul.f32 0.5, %v1242_v30 }
0x132c   :  { %v1250_v9 = vmul.f32 %v1248_v7, %v1244_v32 }
0x1399   :  { %v1253_v17 = vpop.permute.xlu0 %1252 }
0x139a   :  { %v1255_v5 = vmul.f32 %v1253_v17, %v1244_v32 }
0x139c   :  { %1257 = vrot.lane.b32.xlu1 %v1255_v5, %s2400_s7 }
0x140e   :  { %v1258_v42 = vpop.permute.xlu1 %1257 }
0x140f   :  { %v1260_v23 = vadd.f32 %v1258_v42, %v1250_v9 }
0x1411   :  { %2230 = vtanh.f32 %v1260_v23  ;;  %v1360_v62 = vrot.slane %v1260_v23, 6 }
0x1412   :  { %2232 = vtanh.f32 %v1239_v15 }
0x141e   :  { %v2231_v25 = vpop.eup %2230 }
0x141f   :  { %1263 = vrot.lane.b32.xlu0 %v2231_v25, %s2400_s7  ;;  %v2233_v48 = vpop.eup %2232 }
0x1420   :  { %v1243_v27 = vadd.f32 1.0, %v2233_v48 }
0x1422   :  { %v1245_v29 = vmul.f32 0.5, %v1243_v27 }
0x1491   :  { %v1264_v31 = vpop.permute.xlu0 %1263 }
0x1492   :  { %v1266_v36 = vmul.f32 %v1264_v31, %v1245_v29 }
0x1494   :  { %1267 = vst.msk [vmem:[#allocation8 + $0x8] sm:$0x3] %vm311_vm1, %v1266_v36  ;;  %2144 = vmatmul.mubr.msk.f32.vlgmr.msra.gmra.mxu0 %vm91_vm0, %v1266_v36 }
0x1495   :  { %1534 = vmatpush1.msra.mxu0 %v2756_v63  ;;  %1581 = vmatprep.mubr.f32.mxu0 %v2399_v0 }
0x1496   :  { %1535 = vmatprep.subr.mxu0 %v2760_v1 }
0x1497   :  { %1536 = vmatpush1.msra.mxu0 %v2763_v3 }
0x1498   :  { %1537 = vmatprep.subr.mxu0 %v2800_v33 }
0x1499   :  { %1538 = vmatpush1.msra.mxu0 %v2803_v39 }
0x149a   :  { %1539 = vmatprep.subr.mxu0 %v2806_v4 }
0x149b   :  { %1540 = vmatpush1.msra.mxu0 %v2809_v6 }
0x149c   :  { %1541 = vmatprep.subr.mxu0 %v2812_v8 }
0x149d   :  { %1542 = vmatpush1.msra.mxu0 %v2815_v40 }
0x149e   :  { %1543 = vmatprep.subr.mxu0 %v2818_v41 }
0x149f   :  { %1544 = vmatpush1.msra.mxu0 %v2821_v44 }
0x14a0   :  { %1545 = vmatprep.subr.mxu0 %v2824_v45 }
0x14a1   :  { %1546 = vmatpush1.msra.mxu0 %v2827_v46 }
0x14a2   :  { %1547 = vmatprep.subr.mxu0 %v2830_v49 }
0x14a3   :  { %1548 = vmatpush1.msra.mxu0 %v2833_v51 }
0x14a4   :  { %1764 = vmatprep.subr.mxu0 %v2778_v10 }
0x1554   :  { %v1337_v52 = vpop.f32.mrf.mxu0 }
0x1555   :  { %v1344_v55 = vrot.slane %v1337_v52, 6 }
0x1556   :  { %v1339_v35 = vpop.f32.mrf.mxu0 }
0x1557   :  { %v1345_v53 = vrot.slane %v1339_v35, 6  ;;  %v1348_v37 = vadd.f32 %v1344_v55, %v2789_v22 }
0x1559   :  { %v1349_v2 = vadd.f32 %v1345_v53, %v2783_v14  ;;  %v1350_v57 = vmul.f32 0.5, %v1348_v37 }
0x155b   :  { %2234 = vtanh.f32 %v1349_v2  ;;  %v1351_v24 = vmul.f32 0.5, %v1349_v2 }
0x155c   :  { %2236 = vtanh.f32 %v1350_v57 }
0x1568   :  { %v2235_v54 = vpop.eup %2234 }
0x1569   :  { %1364 = vrot.lane.b32.xlu1 %v2235_v54, %s2400_s7  ;;  %v2237_v11 = vpop.eup %2236 }
0x156a   :  { %v1354_v43 = vadd.f32 1.0, %v2237_v11 }
0x156c   :  { %v1356_v58 = vmul.f32 0.5, %v1354_v43 }
0x156e   :  { %v1362_v12 = vmul.f32 %v1360_v62, %v1356_v58 }
0x15db   :  { %v1365_v59 = vpop.permute.xlu1 %1364 }
0x15dc   :  { %v1367_v60 = vmul.f32 %v1365_v59, %v1356_v58 }
0x15de   :  { %1369 = vrot.lane.b32.xlu0 %v1367_v60, %s2400_s7 }
0x1650   :  { %v1370_v16 = vpop.permute.xlu0 %1369 }
0x1651   :  { %v1372_v18 = vadd.f32 %v1370_v16, %v1362_v12 }
0x1653   :  { %2238 = vtanh.f32 %v1372_v18  ;;  %v1484_v53 = vrot.slane %v1372_v18, 6 }
0x1654   :  { %2240 = vtanh.f32 %v1351_v24 }
0x1660   :  { %v2239_v20 = vpop.eup %2238 }
0x1661   :  { %1375 = vrot.lane.b32.xlu1 %v2239_v20, %s2400_s7  ;;  %v2241_v26 = vpop.eup %2240 }
0x1662   :  { %v1355_v28 = vadd.f32 1.0, %v2241_v26 }
0x1664   :  { %v1357_v30 = vmul.f32 0.5, %v1355_v28 }
0x16d3   :  { %v1376_v32 = vpop.permute.xlu1 %1375 }
0x16d4   :  { %v2842_v17 = vmul.f32 %v1376_v32, %v1357_v30 }
0x16d6   :  { %v1392_v5 = vrot.slane %v2842_v17, 2 }
0x16d8   :  { %2145 = vmatmul.mubr.msk.f32.vlgmr.msra.gmra.mxu1 %vm91_vm0, %v1392_v5 }
0x16d9   :  { %1659 = vmatpush1.msra.mxu1 %v2756_v63  ;;  %1706 = vmatprep.mubr.f32.mxu1 %v2399_v0 }
0x16da   :  { %1660 = vmatprep.subr.mxu1 %v2760_v1 }
0x16db   :  { %1661 = vmatpush1.msra.mxu1 %v2763_v3 }
0x16dc   :  { %1662 = vmatprep.subr.mxu1 %v2800_v33 }
0x16dd   :  { %1663 = vmatpush1.msra.mxu1 %v2803_v39 }
0x16de   :  { %1664 = vmatprep.subr.mxu1 %v2806_v4 }
0x16df   :  { %1665 = vmatpush1.msra.mxu1 %v2809_v6 }
0x16e0   :  { %1666 = vmatprep.subr.mxu1 %v2812_v8 }
0x16e1   :  { %1667 = vmatpush1.msra.mxu1 %v2815_v40 }
0x16e2   :  { %1668 = vmatprep.subr.mxu1 %v2818_v41 }
0x16e3   :  { %1669 = vmatpush1.msra.mxu1 %v2821_v44 }
0x16e4   :  { %1670 = vmatprep.subr.mxu1 %v2824_v45 }
0x16e5   :  { %1671 = vmatpush1.msra.mxu1 %v2827_v46 }
0x16e6   :  { %1672 = vmatprep.subr.mxu1 %v2830_v49 }
0x16e7   :  { %1673 = vmatpush1.msra.mxu1 %v2833_v51 }
0x16e8   :  { %1888 = vmatprep.subr.mxu1 %v2778_v10 }
0x1798   :  { %v1461_v7 = vpop.f32.mrf.mxu1 }
0x1799   :  { %v1468_v15 = vrot.slane %v1461_v7, 4 }
0x179a   :  { %v1463_v9 = vpop.f32.mrf.mxu1 }
0x179b   :  { %v1469_v42 = vrot.slane %v1463_v9, 4  ;;  %v1472_v48 = vadd.f32 %v1468_v15, %v2789_v22 }
0x179d   :  { %v1473_v23 = vadd.f32 %v1469_v42, %v2783_v14  ;;  %v1474_v27 = vmul.f32 0.5, %v1472_v48 }
0x179f   :  { %2242 = vtanh.f32 %v1473_v23  ;;  %v1475_v57 = vmul.f32 0.5, %v1473_v23 }
0x17a0   :  { %2244 = vtanh.f32 %v1474_v27 }
0x17ac   :  { %v2243_v25 = vpop.eup %2242 }
0x17ad   :  { %1488 = vrot.lane.b32.xlu0 %v2243_v25, %s2400_s7  ;;  %v2245_v29 = vpop.eup %2244 }
0x17ae   :  { %v1478_v31 = vadd.f32 1.0, %v2245_v29 }
0x17b0   :  { %v1480_v36 = vmul.f32 0.5, %v1478_v31 }
0x17b2   :  { %v1486_v2 = vmul.f32 %v1484_v53, %v1480_v36 }
0x181f   :  { %v1489_v52 = vpop.permute.xlu0 %1488 }
0x1820   :  { %v1491_v35 = vmul.f32 %v1489_v52, %v1480_v36 }
0x1822   :  { %1493 = vrot.lane.b32.xlu1 %v1491_v35, %s2400_s7 }
0x1894   :  { %v1494_v54 = vpop.permute.xlu1 %1493 }
0x1895   :  { %v1496_v55 = vadd.f32 %v1494_v54, %v1486_v2  ;;  %v2915_v54 = vadd.f32 %v2582_v21, %v2531_v38 }
0x1897   :  { %2246 = vtanh.f32 %v1496_v55 }
0x1898   :  { %2248 = vtanh.f32 %v1475_v57 }
0x18a4   :  { %v2247_v37 = vpop.eup %2246 }
0x18a5   :  { %1499 = vrot.lane.b32.xlu0 %v2247_v37, %s2400_s7  ;;  %v2249_v11 = vpop.eup %2248 }
0x18a6   :  { %v1479_v43 = vadd.f32 1.0, %v2249_v11  ;;  %v2921_v11 = vadd.f32 %v2580_v19, %v2539_v47 }
0x18a8   :  { %v1481_v58 = vmul.f32 0.5, %v1479_v43 }
0x1917   :  { %v1500_v59 = vpop.permute.xlu0 %1499 }
0x1918   :  { %v1502_v60 = vmul.f32 %v1500_v59, %v1481_v58 }
0x191a   :  { %v1504_v62 = vcombine.high %v1502_v60, %v1502_v60  ;;  %v1514_v12 = vrot.slane %v1502_v60, 4 }
0x191c   :  { %v1511_v16 = vrot.slane %v1504_v62, %v2616_v50  ;;  %2146 = vmatmul.mubr.msk.f32.vlgmr.msra.gmra.mxu0 %vm91_vm0, %v1514_v12 }
0x191d   :  { %1765 = vmatpush1.msra.mxu0 %v2756_v63  ;;  %1812 = vmatprep.mubr.f32.mxu0 %v2399_v0 }
0x191e   :  { %1513 = vst.msk [vmem:[#allocation8 + $0xa] sm:$0x3] %vm311_vm1, %v1511_v16  ;;  %1766 = vmatprep.subr.mxu0 %v2760_v1 }
0x191f   :  { %1767 = vmatpush1.msra.mxu0 %v2763_v3 }
0x1920   :  { %1768 = vmatprep.subr.mxu0 %v2800_v33 }
0x1921   :  { %1769 = vmatpush1.msra.mxu0 %v2803_v39 }
0x1922   :  { %1770 = vmatprep.subr.mxu0 %v2806_v4 }
0x1923   :  { %1771 = vmatpush1.msra.mxu0 %v2809_v6 }
0x1924   :  { %1772 = vmatprep.subr.mxu0 %v2812_v8 }
0x1925   :  { %1773 = vmatpush1.msra.mxu0 %v2815_v40 }
0x1926   :  { %1774 = vmatprep.subr.mxu0 %v2818_v41 }
0x1927   :  { %1775 = vmatpush1.msra.mxu0 %v2821_v44 }
0x1928   :  { %1776 = vmatprep.subr.mxu0 %v2824_v45 }
0x1929   :  { %1777 = vmatpush1.msra.mxu0 %v2827_v46 }
0x192a   :  { %1778 = vmatprep.subr.mxu0 %v2830_v49 }
0x192b   :  { %1779 = vmatpush1.msra.mxu0 %v2833_v51 }
0x192c   :  { %2010 = vmatprep.subr.mxu0 %v2778_v10  ;;  %v1606_v10 = vrot.slane %v1496_v55, 6 }
0x19dc   :  { %v1583_v18 = vpop.f32.mrf.mxu0 }
0x19dd   :  { %v1590_v30 = vrot.slane %v1583_v18, 2 }
0x19de   :  { %v1585_v20 = vpop.f32.mrf.mxu0 }
0x19df   :  { %v1591_v24 = vrot.slane %v1585_v20, 2  ;;  %v1594_v32 = vadd.f32 %v1590_v30, %v2789_v22 }
0x19e1   :  { %v1595_v26 = vadd.f32 %v1591_v24, %v2783_v14  ;;  %v1596_v5 = vmul.f32 0.5, %v1594_v32 }
0x19e3   :  { %2250 = vtanh.f32 %v1595_v26  ;;  %v1597_v29 = vmul.f32 0.5, %v1595_v26 }
0x19e4   :  { %2252 = vtanh.f32 %v1596_v5 }
0x19f0   :  { %v2251_v28 = vpop.eup %2250 }
0x19f1   :  { %1610 = vrot.lane.b32.xlu1 %v2251_v28, %s2400_s7  ;;  %v2253_v7 = vpop.eup %2252 }
0x19f2   :  { %v1600_v9 = vadd.f32 1.0, %v2253_v7 }
0x19f4   :  { %v1602_v42 = vmul.f32 0.5, %v1600_v9 }
0x19f6   :  { %v1608_v15 = vmul.f32 %v1606_v10, %v1602_v42 }
0x1a63   :  { %v1611_v23 = vpop.permute.xlu1 %1610 }
0x1a64   :  { %v1613_v25 = vmul.f32 %v1611_v23, %v1602_v42 }
0x1a66   :  { %1615 = vrot.lane.b32.xlu0 %v1613_v25, %s2400_s7 }
0x1ad8   :  { %v1616_v48 = vpop.permute.xlu0 %1615 }
0x1ad9   :  { %v1618_v14 = vadd.f32 %v1616_v48, %v1608_v15 }
0x1adb   :  { %2254 = vtanh.f32 %v1618_v14  ;;  %v1725_v12 = vrot.slane %v1618_v14, 6 }
0x1adc   :  { %2256 = vtanh.f32 %v1597_v29 }
0x1ae8   :  { %v2255_v27 = vpop.eup %2254 }
0x1ae9   :  { %1621 = vrot.lane.b32.xlu1 %v2255_v27, %s2400_s7  ;;  %v2257_v22 = vpop.eup %2256 }
0x1aea   :  { %v1601_v31 = vadd.f32 1.0, %v2257_v22 }
0x1aec   :  { %v1603_v36 = vmul.f32 0.5, %v1601_v31 }
0x1b5b   :  { %v1622_v52 = vpop.permute.xlu1 %1621 }
0x1b5c   :  { %v2893_v35 = vmul.f32 %v1622_v52, %v1603_v36 }
0x1b5e   :  { %v1639_v53 = vrot.slane %v2893_v35, 6 }
0x1b60   :  { %2147 = vmatmul.mubr.msk.f32.vlgmr.msra.gmra.mxu1 %vm91_vm0, %v1639_v53 }
0x1b61   :  { %1889 = vmatpush1.msra.mxu1 %v2756_v63  ;;  %1936 = vmatprep.mubr.f32.mxu1 %v2399_v0 }
0x1b62   :  { %1890 = vmatprep.subr.mxu1 %v2760_v1 }
0x1b63   :  { %1891 = vmatpush1.msra.mxu1 %v2763_v3 }
0x1b64   :  { %1892 = vmatprep.subr.mxu1 %v2800_v33 }
0x1b65   :  { %1893 = vmatpush1.msra.mxu1 %v2803_v39 }
0x1b66   :  { %1894 = vmatprep.subr.mxu1 %v2806_v4 }
0x1b67   :  { %1895 = vmatpush1.msra.mxu1 %v2809_v6 }
0x1b68   :  { %1896 = vmatprep.subr.mxu1 %v2812_v8 }
0x1b69   :  { %1897 = vmatpush1.msra.mxu1 %v2815_v40 }
0x1b6a   :  { %1898 = vmatprep.subr.mxu1 %v2818_v41 }
0x1b6b   :  { %1899 = vmatpush1.msra.mxu1 %v2821_v44 }
0x1b6c   :  { %1900 = vmatprep.subr.mxu1 %v2824_v45 }
0x1b6d   :  { %1901 = vmatpush1.msra.mxu1 %v2827_v46 }
0x1b6e   :  { %1902 = vmatprep.subr.mxu1 %v2830_v49 }
0x1b6f   :  { %1903 = vmatpush1.msra.mxu1 %v2833_v51 }
0x1c20   :  { %v1708_v2 = vpop.f32.mrf.mxu1 }
0x1c21   :  { %v1713_v43 = vadd.f32 %v1708_v2, %v2921_v11 }
0x1c22   :  { %v1710_v55 = vpop.f32.mrf.mxu1 }
0x1c23   :  { %v1714_v37 = vadd.f32 %v1710_v55, %v2915_v54  ;;  %v1715_v58 = vmul.f32 0.5, %v1713_v43 }
0x1c25   :  { %2258 = vtanh.f32 %v1714_v37  ;;  %v1716_v47 = vmul.f32 0.5, %v1714_v37 }
0x1c26   :  { %2260 = vtanh.f32 %v1715_v58 }
0x1c32   :  { %v2259_v57 = vpop.eup %2258 }
0x1c33   :  { %1729 = vrot.lane.b32.xlu0 %v2259_v57, %s2400_s7  ;;  %v2261_v59 = vpop.eup %2260 }
0x1c34   :  { %v1719_v60 = vadd.f32 1.0, %v2261_v59 }
0x1c36   :  { %v1721_v62 = vmul.f32 0.5, %v1719_v60 }
0x1c38   :  { %v1727_v16 = vmul.f32 %v1725_v12, %v1721_v62 }
0x1ca5   :  { %v1730_v38 = vpop.permute.xlu0 %1729 }
0x1ca6   :  { %v1732_v21 = vmul.f32 %v1730_v38, %v1721_v62 }
0x1ca8   :  { %1734 = vrot.lane.b32.xlu1 %v1732_v21, %s2400_s7 }
0x1d1a   :  { %v1735_v18 = vpop.permute.xlu1 %1734 }
0x1d1b   :  { %v1737_v20 = vadd.f32 %v1735_v18, %v1727_v16 }
0x1d1d   :  { %2262 = vtanh.f32 %v1737_v20 }
0x1d1e   :  { %2264 = vtanh.f32 %v1716_v47 }
0x1d2a   :  { %v2263_v24 = vpop.eup %2262 }
0x1d2b   :  { %1740 = vrot.lane.b32.xlu0 %v2263_v24, %s2400_s7  ;;  %v2265_v19 = vpop.eup %2264 }
0x1d2c   :  { %v1720_v26 = vadd.f32 1.0, %v2265_v19 }
0x1d2e   :  { %v1722_v28 = vmul.f32 0.5, %v1720_v26 }
0x1d9d   :  { %v1741_v30 = vpop.permute.xlu0 %1740 }
0x1d9e   :  { %v1743_v32 = vmul.f32 %v1741_v30, %v1722_v28 }
0x1da0   :  { %1744 = vst.msk [vmem:[#allocation8 + $0xc] sm:$0x3] %vm311_vm1, %v1743_v32  ;;  %2148 = vmatmul.mubr.msk.f32.vlgmr.msra.gmra.mxu0 %vm91_vm0, %v1743_v32 }
0x1da1   :  { %2011 = vmatpush1.msra.mxu0 %v2756_v63  ;;  %2058 = vmatprep.mubr.f32.mxu0 %v2399_v0 }
0x1da2   :  { %2012 = vmatprep.subr.mxu0 %v2760_v1 }
0x1da3   :  { %2013 = vmatpush1.msra.mxu0 %v2763_v3 }
0x1da4   :  { %2014 = vmatprep.subr.mxu0 %v2800_v33 }
0x1da5   :  { %2015 = vmatpush1.msra.mxu0 %v2803_v39 }
0x1da6   :  { %2016 = vmatprep.subr.mxu0 %v2806_v4 }
0x1da7   :  { %2017 = vmatpush1.msra.mxu0 %v2809_v6 }
0x1da8   :  { %2018 = vmatprep.subr.mxu0 %v2812_v8 }
0x1da9   :  { %2019 = vmatpush1.msra.mxu0 %v2815_v40 }
0x1daa   :  { %2020 = vmatprep.subr.mxu0 %v2818_v41 }
0x1dab   :  { %2021 = vmatpush1.msra.mxu0 %v2821_v44 }
0x1dac   :  { %2022 = vmatprep.subr.mxu0 %v2824_v45 }
0x1dad   :  { %2023 = vmatpush1.msra.mxu0 %v2827_v46  ;;  %v1837_v46 = vrot.slane %v1737_v20, 6 }
0x1dae   :  { %2024 = vmatprep.subr.mxu0 %v2830_v49 }
0x1daf   :  { %2025 = vmatpush1.msra.mxu0 %v2833_v51 }
0x1e60   :  { %v1814_v0 = vpop.f32.mrf.mxu0 }
0x1e61   :  { %v1821_v39 = vrot.slane %v1814_v0, 6 }
0x1e62   :  { %v1816_v63 = vpop.f32.mrf.mxu0 }
0x1e63   :  { %v1822_v1 = vrot.slane %v1816_v63, 6  ;;  %v1825_v4 = vadd.f32 %v1821_v39, %v2921_v11 }
0x1e65   :  { %v1826_v3 = vadd.f32 %v1822_v1, %v2915_v54  ;;  %v1827_v6 = vmul.f32 0.5, %v1825_v4 }
0x1e67   :  { %2266 = vtanh.f32 %v1826_v3  ;;  %v1828_v9 = vmul.f32 0.5, %v1826_v3 }
0x1e68   :  { %2268 = vtanh.f32 %v1827_v6 }
0x1e74   :  { %v2267_v33 = vpop.eup %2266 }
0x1e75   :  { %1841 = vrot.lane.b32.xlu1 %v2267_v33, %s2400_s7  ;;  %v2269_v8 = vpop.eup %2268 }
0x1e76   :  { %v1831_v40 = vadd.f32 1.0, %v2269_v8 }
0x1e78   :  { %v1833_v41 = vmul.f32 0.5, %v1831_v40  ;;  %v431_v40 = vrot.slane %v2589_v56, %v2616_v50 }
0x1e7a   :  { %v1839_v49 = vmul.f32 %v1837_v46, %v1833_v41 }
0x1ee7   :  { %v1842_v44 = vpop.permute.xlu1 %1841 }
0x1ee8   :  { %v1844_v45 = vmul.f32 %v1842_v44, %v1833_v41  ;;  %v909_v44 = vrot.slane %v2701_v13, %v2616_v50 }
0x1eea   :  { %1846 = vrot.lane.b32.xlu0 %v1844_v45, %s2400_s7  ;;  %v910_v45 = vcombine.high %v909_v44, %v909_v44 }
0x1f5c   :  { %v1847_v51 = vpop.permute.xlu0 %1846 }
0x1f5d   :  { %v1849_v5 = vadd.f32 %v1847_v51, %v1839_v49 }
0x1f5f   :  { %2270 = vtanh.f32 %v1849_v5  ;;  %v1961_v58 = vrot.slane %v1849_v5, 6 }
0x1f60   :  { %2272 = vtanh.f32 %v1828_v9 }
0x1f6c   :  { %v2271_v7 = vpop.eup %2270 }
0x1f6d   :  { %1852 = vrot.lane.b32.xlu1 %v2271_v7, %s2400_s7  ;;  %v2273_v42 = vpop.eup %2272 }
0x1f6e   :  { %v1832_v23 = vadd.f32 1.0, %v2273_v42  ;;  %v672_v42 = vcombine.high %v2643_v34, %v2643_v34 }
0x1f70   :  { %v1834_v25 = vmul.f32 0.5, %v1832_v23 }
0x1fdf   :  { %v1853_v10 = vpop.permute.xlu1 %1852 }
0x1fe0   :  { %v2949_v15 = vmul.f32 %v1853_v10, %v1834_v25  ;;  %v1149_v25 = vcombine.high %v2752_v61, %v2752_v61  ;;  %v679_v10 = vrot.slane %v672_v42, %v2616_v50 }
0x1fe2   :  { %v1869_v48 = vrot.slane %v2949_v15, 2  ;;  %v1863_v49 = vrot.slane %v2949_v15, %v2616_v50  ;;  %v1156_v34 = vrot.slane %v1149_v25, %v2616_v50 }
0x1fe4   :  { %2149 = vmatmul.mubr.msk.f32.vlgmr.msra.gmra.mxu1 %vm91_vm0, %v1869_v48  ;;  %v1864_v56 = vcombine.high %v1863_v49, %v1863_v49 }
0x20a4   :  { %v1938_v14 = vpop.f32.mrf.mxu1 }
0x20a5   :  { %v1945_v36 = vrot.slane %v1938_v14, 4  ;;  %v1626_v14 = vcombine.high %v2893_v35, %v2893_v35 }
0x20a6   :  { %v1940_v27 = vpop.f32.mrf.mxu1 }
0x20a7   :  { %v1946_v29 = vrot.slane %v1940_v27, 4  ;;  %v1949_v52 = vadd.f32 %v1945_v36, %v2921_v11  ;;  %v680_v27 = vcombine.high %v679_v10, %v679_v10 }
0x20a9   :  { %v1950_v22 = vadd.f32 %v1946_v29, %v2915_v54  ;;  %v1951_v53 = vmul.f32 0.5, %v1949_v52  ;;  %v1157_v29 = vcombine.high %v1156_v34, %v1156_v34 }
0x20ab   :  { %2274 = vtanh.f32 %v1950_v22  ;;  %v1952_v21 = vmul.f32 0.5, %v1950_v22  ;;  %v1633_v22 = vrot.slane %v1626_v14, %v2616_v50 }
0x20ac   :  { %2276 = vtanh.f32 %v1951_v53 }
0x20ad   :  { %v1634_v61 = vcombine.high %v1633_v22, %v1633_v22 }
0x20b8   :  { %v2275_v31 = vpop.eup %2274 }
0x20b9   :  { %1965 = vrot.lane.b32.xlu0 %v2275_v31, %s2400_s7  ;;  %v2277_v2 = vpop.eup %2276 }
0x20ba   :  { %v1955_v55 = vadd.f32 1.0, %v2277_v2 }
0x20bc   :  { %v1957_v37 = vmul.f32 0.5, %v1955_v55 }
0x20be   :  { %v1963_v59 = vmul.f32 %v1961_v58, %v1957_v37 }
0x212b   :  { %v1966_v57 = vpop.permute.xlu0 %1965 }
0x212c   :  { %v1968_v43 = vmul.f32 %v1966_v57, %v1957_v37 }
0x212e   :  { %1970 = vrot.lane.b32.xlu1 %v1968_v43, %s2400_s7 }
0x21a0   :  { %v1971_v60 = vpop.permute.xlu1 %1970 }
0x21a1   :  { %v1973_v62 = vadd.f32 %v1971_v60, %v1963_v59 }
0x21a3   :  { %2278 = vtanh.f32 %v1973_v62  ;;  %v2083_v51 = vrot.slane %v1973_v62, 6 }
0x21a4   :  { %2280 = vtanh.f32 %v1952_v21 }
0x21b0   :  { %v2279_v38 = vpop.eup %2278 }
0x21b1   :  { %1976 = vrot.lane.b32.xlu0 %v2279_v38, %s2400_s7  ;;  %v2281_v12 = vpop.eup %2280 }
0x21b2   :  { %v1956_v16 = vadd.f32 1.0, %v2281_v12 }
0x21b4   :  { %v1958_v18 = vmul.f32 0.5, %v1956_v16 }
0x2223   :  { %v1977_v20 = vpop.permute.xlu0 %1976 }
0x2224   :  { %v1979_v24 = vmul.f32 %v1977_v20, %v1958_v18 }
0x2226   :  { %v1981_v47 = vcombine.high %v1979_v24, %v1979_v24  ;;  %v1991_v19 = vrot.slane %v1979_v24, 4 }
0x2228   :  { %v1988_v26 = vrot.slane %v1981_v47, %v2616_v50  ;;  %2150 = vmatmul.mubr.msk.f32.vlgmr.msra.gmra.mxu0 %vm91_vm0, %v1991_v19 }
0x222a   :  { %1990 = vst.msk [vmem:[#allocation8 + $0xe] sm:$0x3] %vm311_vm1, %v1988_v26 }
0x22e8   :  { %v2060_v28 = vpop.f32.mrf.mxu0 }
0x22e9   :  { %v2067_v1 = vrot.slane %v2060_v28, 2 }
0x22ea   :  { %v2062_v30 = vpop.f32.mrf.mxu0 }
0x22eb   :  { %v2068_v32 = vrot.slane %v2062_v30, 2  ;;  %v2071_v3 = vadd.f32 %v2067_v1, %v2921_v11  ;;  %v1386_v11 = vrot.slane %v2842_v17, %v2616_v50 }
0x22ed   :  { %v2072_v0 = vadd.f32 %v2068_v32, %v2915_v54  ;;  %v2073_v33 = vmul.f32 0.5, %v2071_v3  ;;  %v432_v54 = vcombine.high %v431_v40, %v431_v40  ;;  %v1387_v46 = vcombine.high %v1386_v11, %v1386_v11 }
0x22ef   :  { %2282 = vtanh.f32 %v2072_v0  ;;  %v2074_v31 = vmul.f32 0.5, %v2072_v0 }
0x22f0   :  { %2284 = vtanh.f32 %v2073_v33 }
0x22fc   :  { %v2283_v63 = vpop.eup %2282 }
0x22fd   :  { %2087 = vrot.lane.b32.xlu1 %v2283_v63, %s2400_s7  ;;  %v2285_v39 = vpop.eup %2284 }
0x22fe   :  { %v2077_v4 = vadd.f32 1.0, %v2285_v39 }
0x2300   :  { %v2079_v6 = vmul.f32 0.5, %v2077_v4 }
0x2302   :  { %v2085_v5 = vmul.f32 %v2083_v51, %v2079_v6 }
0x236f   :  { %v2088_v8 = vpop.permute.xlu1 %2087 }
0x2370   :  { %v2090_v41 = vmul.f32 %v2088_v8, %v2079_v6 }
0x2372   :  { %2092 = vrot.lane.b32.xlu0 %v2090_v41, %s2400_s7 }
0x2376   :  { %433 = vrot.lane.b32.xlu0 %v432_v54, %s2400_s7 }
0x237a   :  { %911 = vrot.lane.b32.xlu0 %v910_v45, %s2400_s7 }
0x237e   :  { %1388 = vrot.lane.b32.xlu0 %v1387_v46, %s2400_s7 }
0x2382   :  { %1865 = vrot.lane.b32.xlu0 %v1864_v56, %s2400_s7 }
0x23e4   :  { %v2093_v13 = vpop.permute.xlu0 %2092 }
0x23e5   :  { %v2095_v7 = vadd.f32 %v2093_v13, %v2085_v5 }
0x23e7   :  { %2286 = vtanh.f32 %v2095_v7 }
0x23e8   :  { %v434_v9 = vpop.permute.xlu0 %433  ;;  %2288 = vtanh.f32 %v2074_v31 }
0x23e9   :  { %437 = vst.msk [vmem:[#allocation8] sm:$0x3] %vm436_vm2, %v434_v9 }
0x23ec   :  { %v912_v17 = vpop.permute.xlu0 %911 }
0x23ed   :  { %914 = vst.msk [vmem:[#allocation8 + $0x4] sm:$0x3] %vm436_vm2, %v912_v17 }
0x23f0   :  { %v1389_v23 = vpop.permute.xlu0 %1388 }
0x23f1   :  { %1391 = vst.msk [vmem:[#allocation8 + $0x8] sm:$0x3] %vm436_vm2, %v1389_v23 }
0x23f4   :  { %v2287_v15 = vpop.eup %2286  ;;  %v1866_v48 = vpop.permute.xlu0 %1865 }
0x23f5   :  { %1868 = vst.msk [vmem:[#allocation8 + $0xc] sm:$0x3] %vm436_vm2, %v1866_v48  ;;  %2098 = vrot.lane.b32.xlu1 %v2287_v15, %s2400_s7  ;;  %v2289_v36 = vpop.eup %2288 }
0x23f6   :  { %v2078_v52 = vadd.f32 1.0, %v2289_v36 }
0x23f8   :  { %v2080_v53 = vmul.f32 0.5, %v2078_v52 }
0x23f9   :  { %681 = vrot.lane.b32.xlu1 %v680_v27, %s2400_s7 }
0x23fd   :  { %1158 = vrot.lane.b32.xlu1 %v1157_v29, %s2400_s7 }
0x2401   :  { %1635 = vrot.lane.b32.xlu1 %v1634_v61, %s2400_s7 }
0x2467   :  { %v2099_v2 = vpop.permute.xlu1 %2098 }
0x2468   :  { %v2101_v35 = vmul.f32 %v2099_v2, %v2080_v53 }
0x246a   :  { %v2103_v55 = vcombine.high %v2101_v35, %v2101_v35 }
0x246b   :  { %v682_v37 = vpop.permute.xlu1 %681 }
0x246c   :  { %v2110_v57 = vrot.slane %v2103_v55, %v2616_v50  ;;  %684 = vst.msk [vmem:[#allocation8 + $0x2] sm:$0x3] %vm436_vm2, %v682_v37 }
0x246e   :  { %v2111_v43 = vcombine.high %v2110_v57, %v2110_v57 }
0x246f   :  { %v1159_v58 = vpop.permute.xlu1 %1158 }
0x2470   :  { %1161 = vst.msk [vmem:[#allocation8 + $0x6] sm:$0x3] %vm436_vm2, %v1159_v58  ;;  %2112 = vrot.lane.b32.xlu1 %v2111_v43, %s2400_s7 }
0x2473   :  { %v1636_v59 = vpop.permute.xlu1 %1635 }
0x2474   :  { %1638 = vst.msk [vmem:[#allocation8 + $0xa] sm:$0x3] %vm436_vm2, %v1636_v59 }
0x24e2   :  { %v2113_v60 = vpop.permute.xlu1 %2112 }
0x24e3   :  { %2115 = vst.msk [vmem:[#allocation8 + $0xe] sm:$0x3] %vm436_vm2, %v2113_v60 }
0x24e4   :  { %2377 = shalt.err (!%p2374_p5)
}
0x24e5   :  { %2125 = dma.vmem_to_hbm [thread:$0]  %s2123_s8, 256, %s3007_s4, [#allocation4]  }
0x24e6   :  { %2390 = dma.done.wait [#allocation4], 256  }
0x24e7   :  { %2391 = vsyncadd [#allocation4], 4294967040 }
0x24e8   :  { %2129 = vsyncpa [#allocation3], 1 }
0x24e9   :  { %2130 = vsyncpa [#allocation6], 1 }
0x24ea   :  { %2131 = vsyncpa [#allocation4], 1 }

</bundles_post_ra>
